<compile_context>
chip_gen: v7x
topology: tpu7x:2x2x1
jax: 0.10.0
libtpu: 0.0.40
codegen_flags: <defaults>
</compile_context>

<pallas_src>
import jax
import jax.numpy as jnp
from jax.experimental import pallas as pl
from jax.experimental.pallas import tpu as pltpu


LANE = 128


def _round_up(x, m):
    return ((x + m - 1) // m) * m


def _tensorcores_per_chip():
    # v7x has 2 TensorCores per chip; v5e/v6e have 1.  Conservative default: 1.
    try:
        kind = jax.devices()[0].device_kind.lower()
    except Exception:
        return 1
    return 2 if "v7" in kind else 1


def _pick_block_b(B):
    ncores = _tensorcores_per_chip()
    cap = 2048 if ncores >= 2 else 1024
    if ncores >= 2 and B >= 2 * LANE:
        # Split the batch across both TensorCores (grid axis is "parallel").
        blk = min(cap, _round_up(pl.cdiv(B, ncores), LANE))
        return min(blk, B)
    # Single-TC chip (v5e/v6e) or tiny batch: one tile spanning the whole batch
    # (block dim == full array dim is always layout-legal), no pointless split.
    if B <= cap:
        return B
    return cap


def branch_mlp_kernel(x_ref,
                      w1_ref, b1_ref,
                      w2_ref, b2_ref,
                      w3_ref, b3_ref,
                      w4_ref, b4_ref,
                      w5_ref, b5_ref,
                      o_ref):
    # Five matmuls + tanh fused per batch tile.  Weights (<150 KB total, bf16,
    # hidden widths lane-padded to 128) stay resident in VMEM; hidden
    # activations are lane-dense so tanh / bias-add are unmasked.  Only the
    # final (block_b, out_size) store is narrow.
    h = x_ref[...].astype(jnp.bfloat16)  # cast-in-kernel (hidden under DMA slack)

    h = jnp.tanh(jnp.dot(h, w1_ref[...], preferred_element_type=jnp.float32)
                 + b1_ref[...]).astype(jnp.bfloat16)
    h = jnp.tanh(jnp.dot(h, w2_ref[...], preferred_element_type=jnp.float32)
                 + b2_ref[...]).astype(jnp.bfloat16)
    h = jnp.tanh(jnp.dot(h, w3_ref[...], preferred_element_type=jnp.float32)
                 + b3_ref[...]).astype(jnp.bfloat16)
    h = jnp.tanh(jnp.dot(h, w4_ref[...], preferred_element_type=jnp.float32)
                 + b4_ref[...]).astype(jnp.bfloat16)
    y = jnp.dot(h, w5_ref[...], preferred_element_type=jnp.float32) + b5_ref[...]

    o_ref[...] = y.astype(o_ref.dtype)


def prepare_branch_params(params):
    """One-time prep (call at init, NOT per forward).

    params: list of (W_t, b) with W_t shaped (in, out), fp32.
    Returns list of (W_padded bf16 (in_pad, out_pad), b_padded fp32 (1, out_pad)).
    Hidden output widths are zero-padded to 128 lanes; the last layer's output
    width is left at the real out_size so the kernel writes a narrow output.
    """
    prepped = []
    prev_out_pad = params[0][0].shape[0]  # K of first layer (unpadded input_size)
    n = len(params)
    for li, (w, b) in enumerate(params):
        fi, fo = w.shape
        fi_pad = prev_out_pad
        fo_pad = fo if li == n - 1 else _round_up(fo, LANE)
        w_p = jnp.zeros((fi_pad, fo_pad), jnp.float32).at[:fi, :fo].set(w)
        b_p = jnp.zeros((1, fo_pad), jnp.float32).at[0, :fo].set(b)
        prepped.append((w_p.astype(jnp.bfloat16), b_p))  # bias stays fp32
        prev_out_pad = fo_pad
    return prepped


def branch_network_forward(x, prepped_params, *, block_b=None):
    """x: (B, input_size) float32.  prepped_params: output of prepare_branch_params."""
    B, in_size = x.shape
    out_size = prepped_params[-1][0].shape[1]

    if block_b is None:
        block_b = _pick_block_b(B)
    grid = (pl.cdiv(B, block_b),)

    flat_args = [x]
    in_specs = [pl.BlockSpec((block_b, in_size), lambda i: (i, 0))]
    for (w_p, b_p) in prepped_params:
        flat_args.append(w_p)
        flat_args.append(b_p)
        in_specs.append(pl.BlockSpec(w_p.shape, lambda i: (0, 0)))
        in_specs.append(pl.BlockSpec(b_p.shape, lambda i: (0, 0)))

    # ---- advisory cost estimate (padded dims) ----
    flops = 2 * B * sum(int(w.shape[0]) * int(w.shape[1]) for w, _ in prepped_params)
    transcendentals = B * sum(int(w.shape[1]) for w, _ in prepped_params[:-1])
    bytes_accessed = (
        x.size * x.dtype.itemsize
        + B * out_size * 4
        + sum(w.size * w.dtype.itemsize + b.size * b.dtype.itemsize
              for w, b in prepped_params)
    )

    out = pl.pallas_call(
        branch_mlp_kernel,
        out_shape=jax.ShapeDtypeStruct((B, out_size), jnp.float32),
        grid_spec=pltpu.PrefetchScalarGridSpec(
            num_scalar_prefetch=0,
            grid=grid,
            in_specs=in_specs,
            out_specs=pl.BlockSpec((block_b, out_size), lambda i: (i, 0)),
        ),
        compiler_params=pltpu.CompilerParams(
            dimension_semantics=("parallel",)),
        cost_estimate=pl.CostEstimate(
            flops=flops,
            transcendentals=transcendentals,
            bytes_accessed=bytes_accessed),
    )(*flat_args)
    return out


def init_linear(key, fan_in, fan_out):
    # PyTorch default Linear init: U(-1/sqrt(fan_in), 1/sqrt(fan_in)).
    kw, kb = jax.random.split(key)
    bound = 1.0 / jnp.sqrt(fan_in)
    # Weight stored already transposed to (in, out).
    w_t = jax.random.uniform(kw, (fan_in, fan_out), jnp.float32, -bound, bound)
    b = jax.random.uniform(kb, (fan_out,), jnp.float32, -bound, bound)
    return w_t, b


def reference_forward_f32(x, params):
    h = x
    for (w, b) in params[:-1]:
        h = jnp.tanh(h @ w + b)
    w, b = params[-1]
    return h @ w + b


def reference_forward_bf16(x, params):
    # Matches the kernel's precision scheme: bf16 matmul inputs, fp32 accumulate.
    h = x.astype(jnp.bfloat16)
    for (w, b) in params[:-1]:
        acc = jnp.dot(h, w.astype(jnp.bfloat16),
                      preferred_element_type=jnp.float32) + b
        h = jnp.tanh(acc).astype(jnp.bfloat16)
    w, b = params[-1]
    return jnp.dot(h, w.astype(jnp.bfloat16),
                   preferred_element_type=jnp.float32) + b


if __name__ == "__main__":
    input_size = 32
    hidden_size = 64
    output_size = 8
    batch = 256  # single tile on v5e/v6e (grid=(1,)); 2 parallel tiles on v7x

    key = jax.random.PRNGKey(0)
    keys = jax.random.split(key, 6)

    dims = [
        (input_size, hidden_size),
        (hidden_size, hidden_size // 2),
        (hidden_size // 2, hidden_size // 4),
        (hidden_size // 4, hidden_size // 8),
        (hidden_size // 8, output_size),
    ]
    params = [init_linear(keys[i], fi, fo) for i, (fi, fo) in enumerate(dims)]

    # One-time weight prep (lane padding + bf16 cast), hoisted out of forward.
    prepped = prepare_branch_params(params)
    prepped = jax.block_until_ready(prepped)

    x = jax.random.normal(keys[5], (batch, input_size), jnp.float32)

    y = branch_network_forward(x, prepped)
    y = jax.block_until_ready(y)

    assert y.shape == (batch, output_size)

    # Tight check against a reference using the same bf16/f32 precision scheme.
    y_ref_bf16 = reference_forward_bf16(x, params)
    assert jnp.allclose(y, y_ref_bf16, atol=1e-2, rtol=1e-2), \
        "mismatch vs bf16-matched reference"

    # Looser sanity check against the pure fp32 reference (bf16 rounding only).
    y_ref_f32 = reference_forward_f32(x, params)
    assert jnp.allclose(y, y_ref_f32, atol=5e-2, rtol=5e-2), \
        "mismatch vs fp32 reference"

    print("KERNEL_OK")
</pallas_src>

<mosaic_0001>
module attributes {stable_mosaic.version = 11 : i64} {
  func.func @branch_mlp_kernel(%arg0: i32, %arg1: memref<256x32xf32, #tpu.memory_space<vmem>>, %arg2: memref<32x128xbf16, #tpu.memory_space<vmem>>, %arg3: memref<1x128xf32, #tpu.memory_space<vmem>>, %arg4: memref<128x128xbf16, #tpu.memory_space<vmem>>, %arg5: memref<1x128xf32, #tpu.memory_space<vmem>>, %arg6: memref<128x128xbf16, #tpu.memory_space<vmem>>, %arg7: memref<1x128xf32, #tpu.memory_space<vmem>>, %arg8: memref<128x128xbf16, #tpu.memory_space<vmem>>, %arg9: memref<1x128xf32, #tpu.memory_space<vmem>>, %arg10: memref<128x8xbf16, #tpu.memory_space<vmem>>, %arg11: memref<1x8xf32, #tpu.memory_space<vmem>>, %arg12: memref<256x8xf32, #tpu.memory_space<vmem>>) attributes {dimension_semantics = [#tpu.dimension_semantics<parallel>], iteration_bounds = array<i64: 1>, scalar_prefetch = 0 : i64, scratch_operands = 0 : i64, tpu.core_type = #tpu.core_type<tc>, window_params = [{transform_indices = @transform_0, window_bounds = array<i64: 256, 32>}, {pipeline_mode = #tpu.pipeline_mode<synchronous>, transform_indices = @transform_1, window_bounds = array<i64: 32, 128>}, {pipeline_mode = #tpu.pipeline_mode<synchronous>, transform_indices = @transform_2, window_bounds = array<i64: 1, 128>}, {pipeline_mode = #tpu.pipeline_mode<synchronous>, transform_indices = @transform_3, window_bounds = array<i64: 128, 128>}, {pipeline_mode = #tpu.pipeline_mode<synchronous>, transform_indices = @transform_4, window_bounds = array<i64: 1, 128>}, {pipeline_mode = #tpu.pipeline_mode<synchronous>, transform_indices = @transform_5, window_bounds = array<i64: 128, 128>}, {pipeline_mode = #tpu.pipeline_mode<synchronous>, transform_indices = @transform_6, window_bounds = array<i64: 1, 128>}, {pipeline_mode = #tpu.pipeline_mode<synchronous>, transform_indices = @transform_7, window_bounds = array<i64: 128, 128>}, {pipeline_mode = #tpu.pipeline_mode<synchronous>, transform_indices = @transform_8, window_bounds = array<i64: 1, 128>}, {pipeline_mode = #tpu.pipeline_mode<synchronous>, transform_indices = @transform_9, window_bounds = array<i64: 128, 8>}, {pipeline_mode = #tpu.pipeline_mode<synchronous>, transform_indices = @transform_10, window_bounds = array<i64: 1, 8>}, {transform_indices = @transform_11, window_bounds = array<i64: 256, 8>}]} {
    %c0 = arith.constant 0 : index
    %c0_0 = arith.constant 0 : index
    %0 = vector.load %arg1[%c0, %c0_0] : memref<256x32xf32, #tpu.memory_space<vmem>>, vector<256x32xf32>
    %1 = arith.truncf %0 : vector<256x32xf32> to vector<256x32xbf16>
    %c0_1 = arith.constant 0 : index
    %c0_2 = arith.constant 0 : index
    %2 = vector.load %arg2[%c0_1, %c0_2] : memref<32x128xbf16, #tpu.memory_space<vmem>>, vector<32x128xbf16>
    %cst = arith.constant dense<0.000000e+00> : vector<256x128xf32>
    %3 = tpu.matmul %1, %2, %cst {dimension_numbers = #tpu.dot_dimension_numbers<[1], [0], [0], [1], [0, 0, 1, 1], [], []>} : vector<256x32xbf16>, vector<32x128xbf16>, vector<256x128xf32> -> vector<256x128xf32>
    %c0_3 = arith.constant 0 : index
    %c0_4 = arith.constant 0 : index
    %4 = vector.load %arg3[%c0_3, %c0_4] : memref<1x128xf32, #tpu.memory_space<vmem>>, vector<1x128xf32>
    %5 = vector.broadcast %4 : vector<1x128xf32> to vector<256x128xf32>
    %6 = arith.addf %3, %5 : vector<256x128xf32>
    %7 = math.tanh %6 : vector<256x128xf32>
    %8 = arith.truncf %7 : vector<256x128xf32> to vector<256x128xbf16>
    %c0_5 = arith.constant 0 : index
    %c0_6 = arith.constant 0 : index
    %9 = vector.load %arg4[%c0_5, %c0_6] : memref<128x128xbf16, #tpu.memory_space<vmem>>, vector<128x128xbf16>
    %cst_7 = arith.constant dense<0.000000e+00> : vector<256x128xf32>
    %10 = tpu.matmul %8, %9, %cst_7 {dimension_numbers = #tpu.dot_dimension_numbers<[1], [0], [0], [1], [0, 0, 1, 1], [], []>} : vector<256x128xbf16>, vector<128x128xbf16>, vector<256x128xf32> -> vector<256x128xf32>
    %c0_8 = arith.constant 0 : index
    %c0_9 = arith.constant 0 : index
    %11 = vector.load %arg5[%c0_8, %c0_9] : memref<1x128xf32, #tpu.memory_space<vmem>>, vector<1x128xf32>
    %12 = vector.broadcast %11 : vector<1x128xf32> to vector<256x128xf32>
    %13 = arith.addf %10, %12 : vector<256x128xf32>
    %14 = math.tanh %13 : vector<256x128xf32>
    %15 = arith.truncf %14 : vector<256x128xf32> to vector<256x128xbf16>
    %c0_10 = arith.constant 0 : index
    %c0_11 = arith.constant 0 : index
    %16 = vector.load %arg6[%c0_10, %c0_11] : memref<128x128xbf16, #tpu.memory_space<vmem>>, vector<128x128xbf16>
    %cst_12 = arith.constant dense<0.000000e+00> : vector<256x128xf32>
    %17 = tpu.matmul %15, %16, %cst_12 {dimension_numbers = #tpu.dot_dimension_numbers<[1], [0], [0], [1], [0, 0, 1, 1], [], []>} : vector<256x128xbf16>, vector<128x128xbf16>, vector<256x128xf32> -> vector<256x128xf32>
    %c0_13 = arith.constant 0 : index
    %c0_14 = arith.constant 0 : index
    %18 = vector.load %arg7[%c0_13, %c0_14] : memref<1x128xf32, #tpu.memory_space<vmem>>, vector<1x128xf32>
    %19 = vector.broadcast %18 : vector<1x128xf32> to vector<256x128xf32>
    %20 = arith.addf %17, %19 : vector<256x128xf32>
    %21 = math.tanh %20 : vector<256x128xf32>
    %22 = arith.truncf %21 : vector<256x128xf32> to vector<256x128xbf16>
    %c0_15 = arith.constant 0 : index
    %c0_16 = arith.constant 0 : index
    %23 = vector.load %arg8[%c0_15, %c0_16] : memref<128x128xbf16, #tpu.memory_space<vmem>>, vector<128x128xbf16>
    %cst_17 = arith.constant dense<0.000000e+00> : vector<256x128xf32>
    %24 = tpu.matmul %22, %23, %cst_17 {dimension_numbers = #tpu.dot_dimension_numbers<[1], [0], [0], [1], [0, 0, 1, 1], [], []>} : vector<256x128xbf16>, vector<128x128xbf16>, vector<256x128xf32> -> vector<256x128xf32>
    %c0_18 = arith.constant 0 : index
    %c0_19 = arith.constant 0 : index
    %25 = vector.load %arg9[%c0_18, %c0_19] : memref<1x128xf32, #tpu.memory_space<vmem>>, vector<1x128xf32>
    %26 = vector.broadcast %25 : vector<1x128xf32> to vector<256x128xf32>
    %27 = arith.addf %24, %26 : vector<256x128xf32>
    %28 = math.tanh %27 : vector<256x128xf32>
    %29 = arith.truncf %28 : vector<256x128xf32> to vector<256x128xbf16>
    %c0_20 = arith.constant 0 : index
    %c0_21 = arith.constant 0 : index
    %30 = vector.load %arg10[%c0_20, %c0_21] : memref<128x8xbf16, #tpu.memory_space<vmem>>, vector<128x8xbf16>
    %cst_22 = arith.constant dense<0.000000e+00> : vector<256x8xf32>
    %31 = tpu.matmul %29, %30, %cst_22 {dimension_numbers = #tpu.dot_dimension_numbers<[1], [0], [0], [1], [0, 0, 1, 1], [], []>} : vector<256x128xbf16>, vector<128x8xbf16>, vector<256x8xf32> -> vector<256x8xf32>
    %c0_23 = arith.constant 0 : index
    %c0_24 = arith.constant 0 : index
    %32 = vector.load %arg11[%c0_23, %c0_24] : memref<1x8xf32, #tpu.memory_space<vmem>>, vector<1x8xf32>
    %33 = vector.broadcast %32 : vector<1x8xf32> to vector<256x8xf32>
    %34 = arith.addf %31, %33 : vector<256x8xf32>
    %c0_25 = arith.constant 0 : index
    %c0_26 = arith.constant 0 : index
    %35 = vector.load %arg12[%c0_25, %c0_26] : memref<256x8xf32, #tpu.memory_space<vmem>>, vector<256x8xf32>
    tpu.vector_store %arg12[%c0_25, %c0_26], %34 {strides = array<i32>} : memref<256x8xf32, #tpu.memory_space<vmem>>, vector<256x8xf32>,
    return
  }
  func.func @transform_0(%arg0: i32) -> (i32, i32) {
    %c0_i32 = arith.constant 0 : i32
    %c0_i32_0 = arith.constant 0 : i32
    return %arg0, %c0_i32 : i32, i32
  }
  func.func @transform_1(%arg0: i32) -> (i32, i32) {
    %c0_i32 = arith.constant 0 : i32
    %c0_i32_0 = arith.constant 0 : i32
    %c0_i32_1 = arith.constant 0 : i32
    return %c0_i32, %c0_i32_0 : i32, i32
  }
  func.func @transform_2(%arg0: i32) -> (i32, i32) {
    %c0_i32 = arith.constant 0 : i32
    %c0_i32_0 = arith.constant 0 : i32
    %c0_i32_1 = arith.constant 0 : i32
    return %c0_i32, %c0_i32_0 : i32, i32
  }
  func.func @transform_3(%arg0: i32) -> (i32, i32) {
    %c0_i32 = arith.constant 0 : i32
    %c0_i32_0 = arith.constant 0 : i32
    %c0_i32_1 = arith.constant 0 : i32
    return %c0_i32, %c0_i32_0 : i32, i32
  }
  func.func @transform_4(%arg0: i32) -> (i32, i32) {
    %c0_i32 = arith.constant 0 : i32
    %c0_i32_0 = arith.constant 0 : i32
    %c0_i32_1 = arith.constant 0 : i32
    return %c0_i32, %c0_i32_0 : i32, i32
  }
  func.func @transform_5(%arg0: i32) -> (i32, i32) {
    %c0_i32 = arith.constant 0 : i32
    %c0_i32_0 = arith.constant 0 : i32
    %c0_i32_1 = arith.constant 0 : i32
    return %c0_i32, %c0_i32_0 : i32, i32
  }
  func.func @transform_6(%arg0: i32) -> (i32, i32) {
    %c0_i32 = arith.constant 0 : i32
    %c0_i32_0 = arith.constant 0 : i32
    %c0_i32_1 = arith.constant 0 : i32
    return %c0_i32, %c0_i32_0 : i32, i32
  }
  func.func @transform_7(%arg0: i32) -> (i32, i32) {
    %c0_i32 = arith.constant 0 : i32
    %c0_i32_0 = arith.constant 0 : i32
    %c0_i32_1 = arith.constant 0 : i32
    return %c0_i32, %c0_i32_0 : i32, i32
  }
  func.func @transform_8(%arg0: i32) -> (i32, i32) {
    %c0_i32 = arith.constant 0 : i32
    %c0_i32_0 = arith.constant 0 : i32
    %c0_i32_1 = arith.constant 0 : i32
    return %c0_i32, %c0_i32_0 : i32, i32
  }
  func.func @transform_9(%arg0: i32) -> (i32, i32) {
    %c0_i32 = arith.constant 0 : i32
    %c0_i32_0 = arith.constant 0 : i32
    %c0_i32_1 = arith.constant 0 : i32
    return %c0_i32, %c0_i32_0 : i32, i32
  }
  func.func @transform_10(%arg0: i32) -> (i32, i32) {
    %c0_i32 = arith.constant 0 : i32
    %c0_i32_0 = arith.constant 0 : i32
    %c0_i32_1 = arith.constant 0 : i32
    return %c0_i32, %c0_i32_0 : i32, i32
  }
  func.func @transform_11(%arg0: i32) -> (i32, i32) {
    %c0_i32 = arith.constant 0 : i32
    %c0_i32_0 = arith.constant 0 : i32
    return %arg0, %c0_i32 : i32, i32
  }
}

</mosaic_0001>

<bundles_post_ra>
// kernel: tpu_custom_call.1
= control target key start
LH: loop header
LB: loop body
LE: loop exit
PB: predicated region body
PF: predicated region fallthrough
CT: control target
= control target key end

     0   :  { %vm110_vm0 = vcmask 261120   ;;  %vm1440_vm1 = vcmask 64512   ;;  %s2776_s1 = inlined_call_operand.vmem [shape: bf16[32,128], index: 1, kind: input, shape index: {}]   ;;  %s2777_s0 = inlined_call_operand.vmem [shape: f32[256,32], index: 0, kind: input, shape index: {}]   ;;  %s2778_s3 = inlined_call_operand.vmem [shape: bf16[128,128], index: 3, kind: input, shape index: {}]   ;;  %s2779_s5 = inlined_call_operand.vmem [shape: bf16[128,128], index: 5, kind: input, shape index: {}]   ;;  %s2780_s2 = inlined_call_operand.vmem [shape: f32[1,128], index: 2, kind: input, shape index: {}]   ;;  %s2781_s7 = inlined_call_operand.vmem [shape: bf16[128,128], index: 7, kind: input, shape index: {}]   ;;  %s2782_s4 = inlined_call_operand.vmem [shape: f32[1,128], index: 4, kind: input, shape index: {}]   ;;  %s2783_s9 = inlined_call_operand.vmem [shape: bf16[128,8], index: 9, kind: input, shape index: {}]   ;;  %s2784_s6 = inlined_call_operand.vmem [shape: f32[1,128], index: 6, kind: input, shape index: {}]   ;;  %s2785_s8 = inlined_call_operand.vmem [shape: f32[1,128], index: 8, kind: input, shape index: {}]   ;;  %s2786_s10 = inlined_call_operand.vmem [shape: f32[1,8], index: 10, kind: input, shape index: {}]   ;;  %s2787_s11 = inlined_call_operand.vmem [shape: f32[256,8], index: 11, kind: output, shape index: {}]  }
   0x1   :  { %v1878_v0 = vld [vmem:[%s2776_s1] sm:$0xff]   ;;  %v1879_v1 = vld [vmem:[%s2776_s1 + $0x8] sm:$0xff]   ;;  %v41_v5 = vld [vmem:[%s2777_s0 + $0x10] sm:$0xff] }
   0x2   :  { %1646 = vmatprep.subr.bf16.mxu0 %v1878_v0  ;;  %v39_v2 = vld [vmem:[%s2777_s0] sm:$0xff]  ;;  %v40_v3 = vld [vmem:[%s2777_s0 + $0x8] sm:$0xff]  ;;  %1874 = vmatprep.subr.bf16.mxu1 %v1878_v0  ;;  %v42_v6 = vld [vmem:[%s2777_s0 + $0x18] sm:$0xff] }
   0x3   :  { %1647 = vmatpush3.bf16.msra.mxu0 %v1878_v0  ;;  %v71_v4 = vpack.c.bf16 %v40_v3, %v39_v2  ;;  %1876 = vmatpush3.bf16.msra.mxu1 %v1878_v0  ;;  %v43_v7 = vld [vmem:[%s2777_s0 + $0x20] sm:$0xff]  ;;  %v44_v8 = vld [vmem:[%s2777_s0 + $0x28] sm:$0xff]  ;;  %v72_v9 = vpack.c.bf16 %v42_v6, %v41_v5  ;;  %v57_v14 = vld [vmem:[%s2777_s0 + $0x90] sm:$0xff] }
   0x4   :  { %1648 = vmatprep.subr.bf16.mxu0 %v1879_v1  ;;  %1875 = vmatprep.subr.bf16.mxu1 %v1879_v1  ;;  %v73_v10 = vpack.c.bf16 %v44_v8, %v43_v7  ;;  %v55_v11 = vld [vmem:[%s2777_s0 + $0x80] sm:$0xff]  ;;  %v56_v12 = vld [vmem:[%s2777_s0 + $0x88] sm:$0xff]  ;;  %v58_v15 = vld [vmem:[%s2777_s0 + $0x98] sm:$0xff] }
   0x5   :  { %1650 = vmatprep.mubr.msk.bf16.mxu0 %vm110_vm0, %v71_v4  ;;  %v79_v13 = vpack.c.bf16 %v56_v12, %v55_v11  ;;  %v59_v16 = vld [vmem:[%s2777_s0 + $0xa0] sm:$0xff]  ;;  %v80_v17 = vpack.c.bf16 %v58_v15, %v57_v14  ;;  %v60_v18 = vld [vmem:[%s2777_s0 + $0xa8] sm:$0xff]  ;;  %v45_v19 = vld [vmem:[%s2777_s0 + $0x30] sm:$0xff] }
   0x6   :  { %v46_v20 = vld [vmem:[%s2777_s0 + $0x38] sm:$0xff]  ;;  %v47_v21 = vld [vmem:[%s2777_s0 + $0x40] sm:$0xff]  ;;  %v81_v22 = vpack.c.bf16 %v60_v18, %v59_v16  ;;  %v48_v23 = vld [vmem:[%s2777_s0 + $0x48] sm:$0xff] }
   0x7   :  { %1649 = vmatpush3.bf16.msra.mxu0 %v1879_v1  ;;  %1877 = vmatpush3.bf16.msra.mxu1 %v1879_v1  ;;  %v61_v24 = vld [vmem:[%s2777_s0 + $0xb0] sm:$0xff]  ;;  %v62_v25 = vld [vmem:[%s2777_s0 + $0xb8] sm:$0xff]  ;;  %v63_v26 = vld [vmem:[%s2777_s0 + $0xc0] sm:$0xff]  ;;  %v74_v29 = vpack.c.bf16 %v46_v20, %v45_v19  ;;  %v75_v31 = vpack.c.bf16 %v48_v23, %v47_v21 }
   0x8   :  { %1666 = vmatprep.mubr.msk.bf16.mxu1 %vm110_vm0, %v79_v13  ;;  %v64_v27 = vld [vmem:[%s2777_s0 + $0xc8] sm:$0xff]  ;;  %v1880_v28 = vld [vmem:[%s2778_s3] sm:$0xff]   ;;  %v82_v32 = vpack.c.bf16 %v62_v25, %v61_v24  ;;  %v1882_v34 = vld [vmem:[%s2778_s3 + $0x10] sm:$0xff]  }
   0x9   :  { %v1881_v30 = vld [vmem:[%s2778_s3 + $0x8] sm:$0xff]   ;;  %1682 = vmatprep.subr.bf16.mxu1 %v1880_v28  ;;  %v83_v33 = vpack.c.bf16 %v64_v27, %v63_v26  ;;  %v49_v35 = vld [vmem:[%s2777_s0 + $0x50] sm:$0xff]  ;;  %v50_v36 = vld [vmem:[%s2777_s0 + $0x58] sm:$0xff] }
   0xa   :  { %1651 = vmatmul.mubr.msk.bf16.vlgmr.msra.gmra.mrb[0].mxu0 %vm110_vm0, %v72_v9  ;;  %1667 = vmatmul.mubr.msk.bf16.vlgmr.msra.gmra.mrb[0].mxu1 %vm110_vm0, %v80_v17  ;;  %v51_v37 = vld [vmem:[%s2777_s0 + $0x60] sm:$0xff]  ;;  %v52_v38 = vld [vmem:[%s2777_s0 + $0x68] sm:$0xff]  ;;  %v65_v39 = vld [vmem:[%s2777_s0 + $0xd0] sm:$0xff]  ;;  %v76_v44 = vpack.c.bf16 %v50_v36, %v49_v35 }
   0xb   :  { %1654 = vmatprep.mubr.msk.bf16.mxu0 %vm110_vm0, %v73_v10  ;;  %1670 = vmatprep.mubr.msk.bf16.mxu1 %vm110_vm0, %v81_v22  ;;  %v66_v40 = vld [vmem:[%s2777_s0 + $0xd8] sm:$0xff]  ;;  %v67_v41 = vld [vmem:[%s2777_s0 + $0xe0] sm:$0xff]  ;;  %v68_v42 = vld [vmem:[%s2777_s0 + $0xe8] sm:$0xff]  ;;  %v77_v45 = vpack.c.bf16 %v52_v38, %v51_v37 }
   0xc   :  { %1683 = vmatpush3.bf16.msra.mxu1 %v1880_v28  ;;  %v1883_v43 = vld [vmem:[%s2778_s3 + $0x18] sm:$0xff]   ;;  %v84_v46 = vpack.c.bf16 %v66_v40, %v65_v39  ;;  %v85_v47 = vpack.c.bf16 %v68_v42, %v67_v41  ;;  %v53_v48 = vld [vmem:[%s2777_s0 + $0x70] sm:$0xff]  ;;  %v1884_v54 = vld [vmem:[%s2778_s3 + $0x20] sm:$0xff]  }
   0xd   :  { %1684 = vmatprep.subr.bf16.mxu1 %v1881_v30  ;;  %v54_v49 = vld [vmem:[%s2777_s0 + $0x78] sm:$0xff]  ;;  %v69_v50 = vld [vmem:[%s2777_s0 + $0xf0] sm:$0xff]  ;;  %v1885_v55 = vld [vmem:[%s2778_s3 + $0x28] sm:$0xff]  }
   0xe   :  { %v70_v51 = vld [vmem:[%s2777_s0 + $0xf8] sm:$0xff]  ;;  %v78_v52 = vpack.c.bf16 %v54_v49, %v53_v48  ;;  %v1886_v56 = vld [vmem:[%s2778_s3 + $0x30] sm:$0xff]   ;;  %v1888_v58 = vld [vmem:[%s2779_s5] sm:$0xff]  }
   0xf   :  { %v86_v53 = vpack.c.bf16 %v70_v51, %v69_v50  ;;  %v1887_v57 = vld [vmem:[%s2778_s3 + $0x38] sm:$0xff]   ;;  %v1889_v59 = vld [vmem:[%s2779_s5 + $0x8] sm:$0xff]   ;;  %1730 = vmatprep.subr.bf16.mxu0 %v1888_v58  ;;  %v1890_v60 = vld [vmem:[%s2779_s5 + $0x10] sm:$0xff]  }
  0x10   :  { %1685 = vmatpush3.bf16.msra.mxu1 %v1881_v30  ;;  %1731 = vmatpush3.bf16.msra.mxu0 %v1888_v58  ;;  %v1891_v61 = vld [vmem:[%s2779_s5 + $0x18] sm:$0xff]   ;;  %v2385_v62 = vld [vmem:[%s2780_s2] ss:$0 sm:$0xff] }
  0x11   :  { %1686 = vmatprep.subr.bf16.mxu1 %v1882_v34  ;;  %1732 = vmatprep.subr.bf16.mxu0 %v1889_v59 }
  0x12   :  { %1655 = vmatmul.mubr.msk.bf16.gmra.mrb[4].mxu0 %vm110_vm0, %v74_v29  ;;  %1671 = vmatmul.mubr.msk.bf16.gmra.mrb[4].mxu1 %vm110_vm0, %v82_v32 }
  0x13   :  { %1658 = vmatprep.mubr.msk.bf16.mxu0 %vm110_vm0, %v75_v31  ;;  %1674 = vmatprep.mubr.msk.bf16.mxu1 %vm110_vm0, %v83_v33 }
  0x14   :  { %1687 = vmatpush3.bf16.msra.mxu1 %v1882_v34  ;;  %1733 = vmatpush3.bf16.msra.mxu0 %v1889_v59 }
  0x15   :  { %1688 = vmatprep.subr.bf16.mxu1 %v1883_v43  ;;  %1734 = vmatprep.subr.bf16.mxu0 %v1890_v60 }
  0x18   :  { %1689 = vmatpush3.bf16.msra.mxu1 %v1883_v43  ;;  %1735 = vmatpush3.bf16.msra.mxu0 %v1890_v60 }
  0x19   :  { %1690 = vmatprep.subr.bf16.mxu1 %v1884_v54  ;;  %1736 = vmatprep.subr.bf16.mxu0 %v1891_v61 }
  0x1a   :  { %1659 = vmatmul.mubr.msk.bf16.gmra.mrb[8].mxu0 %vm110_vm0, %v76_v44  ;;  %1675 = vmatmul.mubr.msk.bf16.gmra.mrb[8].mxu1 %vm110_vm0, %v84_v46 }
  0x1b   :  { %1662 = vmatprep.mubr.msk.bf16.mxu0 %vm110_vm0, %v77_v45  ;;  %1678 = vmatprep.mubr.msk.bf16.mxu1 %vm110_vm0, %v85_v47 }
  0x1c   :  { %1691 = vmatpush3.bf16.msra.mxu1 %v1884_v54  ;;  %1737 = vmatpush3.bf16.msra.mxu0 %v1891_v61 }
  0x1d   :  { %1692 = vmatprep.subr.bf16.mxu1 %v1885_v55 }
  0x20   :  { %1693 = vmatpush3.bf16.msra.mxu1 %v1885_v55 }
  0x21   :  { %1694 = vmatprep.subr.bf16.mxu1 %v1886_v56 }
  0x22   :  { %1663 = vmatmul.mubr.msk.bf16.gmra.mrb[12].mxu0 %vm110_vm0, %v78_v52  ;;  %1679 = vmatmul.mubr.msk.bf16.gmra.mrb[12].mxu1 %vm110_vm0, %v86_v53 }
  0x24   :  { %1695 = vmatpush3.bf16.msra.mxu1 %v1886_v56 }
  0x25   :  { %1696 = vmatprep.subr.bf16.mxu1 %v1887_v57 }
  0x28   :  { %1697 = vmatpush3.bf16.msra.mxu1 %v1887_v57 }
  0xdd   :  { %v1652_v63 = vpop.f32.mrb[0].mxu0  ;;  %v1668_v2 = vpop.f32.mrb[0].mxu1 }
  0xde   :  { %v202_v0 = vadd.f32 %v1652_v63, %v2385_v62  ;;  %v193_v1 = vpop.f32.mrb[1].mxu0  ;;  %v257_v5 = vpop.f32.mrb[1].mxu1  ;;  %v266_v8 = vadd.f32 %v1668_v2, %v2385_v62 }
  0xdf   :  { %v194_v3 = vadd.f32 %v2385_v62, %v193_v1  ;;  %v1653_v4 = vpop.f32.mrb[2].mxu0  ;;  %v1669_v9 = vpop.f32.mrb[2].mxu1  ;;  %v258_v11 = vadd.f32 %v2385_v62, %v257_v5 }
  0xe0   :  { %1912 = vtanh.f32 %v202_v0  ;;  %v205_v6 = vadd.f32 %v1653_v4, %v2385_v62  ;;  %v196_v7 = vpop.f32.mrb[3].mxu0  ;;  %v260_v12 = vpop.f32.mrb[3].mxu1  ;;  %v269_v13 = vadd.f32 %v1669_v9, %v2385_v62 }
  0xe1   :  { %1914 = vtanh.f32 %v194_v3  ;;  %v197_v10 = vadd.f32 %v2385_v62, %v196_v7  ;;  %v261_v14 = vadd.f32 %v2385_v62, %v260_v12 }
  0xe2   :  { %1916 = vtanh.f32 %v205_v6 }
  0xe3   :  { %1918 = vtanh.f32 %v197_v10 }
  0xe4   :  { %1920 = vtanh.f32 %v266_v8 }
  0xe5   :  { %v1656_v15 = vpop.f32.mrb[4].mxu0  ;;  %1922 = vtanh.f32 %v258_v11  ;;  %v1672_v18 = vpop.f32.mrb[4].mxu1 }
  0xe6   :  { %v218_v16 = vadd.f32 %v1656_v15, %v2385_v62  ;;  %v209_v17 = vpop.f32.mrb[5].mxu0  ;;  %1924 = vtanh.f32 %v269_v13  ;;  %v273_v21 = vpop.f32.mrb[5].mxu1  ;;  %v282_v24 = vadd.f32 %v1672_v18, %v2385_v62 }
  0xe7   :  { %v210_v19 = vadd.f32 %v2385_v62, %v209_v17  ;;  %v1657_v20 = vpop.f32.mrb[6].mxu0  ;;  %1926 = vtanh.f32 %v261_v14  ;;  %v1673_v25 = vpop.f32.mrb[6].mxu1  ;;  %v274_v27 = vadd.f32 %v2385_v62, %v273_v21 }
  0xe8   :  { %1928 = vtanh.f32 %v218_v16  ;;  %v221_v22 = vadd.f32 %v1657_v20, %v2385_v62  ;;  %v212_v23 = vpop.f32.mrb[7].mxu0  ;;  %v276_v28 = vpop.f32.mrb[7].mxu1  ;;  %v285_v30 = vadd.f32 %v1673_v25, %v2385_v62 }
  0xe9   :  { %1930 = vtanh.f32 %v210_v19  ;;  %v213_v26 = vadd.f32 %v2385_v62, %v212_v23  ;;  %v277_v32 = vadd.f32 %v2385_v62, %v276_v28 }
  0xea   :  { %v1913_v29 = vpop.eup %1912  ;;  %1932 = vtanh.f32 %v221_v22 }
  0xeb   :  { %v1915_v31 = vpop.eup %1914  ;;  %1934 = vtanh.f32 %v213_v26 }
  0xec   :  { %v1917_v33 = vpop.eup %1916  ;;  %1936 = vtanh.f32 %v282_v24 }
  0xed   :  { %v1919_v34 = vpop.eup %1918  ;;  %v1660_v35 = vpop.f32.mrb[8].mxu0  ;;  %v353_v36 = vpack.c.bf16 %v1917_v33, %v1913_v29  ;;  %1938 = vtanh.f32 %v274_v27 }
  0xee   :  { %v2403_v37 = vpop.eup %1920  ;;  %v234_v38 = vadd.f32 %v1660_v35, %v2385_v62  ;;  %v225_v39 = vpop.f32.mrb[9].mxu0  ;;  %v352_v40 = vpack.c.bf16 %v1919_v34, %v1915_v31  ;;  %1940 = vtanh.f32 %v285_v30 }
  0xef   :  { %v1676_v41 = vpop.f32.mrb[8].mxu1  ;;  %v2406_v42 = vpop.eup %1922  ;;  %v226_v43 = vadd.f32 %v2385_v62, %v225_v39  ;;  %1942 = vtanh.f32 %v277_v32 }
  0xf0   :  { %v1661_v44 = vpop.f32.mrb[10].mxu0  ;;  %v289_v45 = vpop.f32.mrb[9].mxu1  ;;  %1944 = vtanh.f32 %v234_v38  ;;  %1698 = vmatprep.mubr.bf16.mxu1 %v352_v40  ;;  %v298_v49 = vadd.f32 %v1676_v41, %v2385_v62 }
  0xf1   :  { %v2409_v46 = vpop.eup %1924  ;;  %v237_v47 = vadd.f32 %v1661_v44, %v2385_v62  ;;  %v228_v48 = vpop.f32.mrb[11].mxu0  ;;  %1946 = vtanh.f32 %v226_v43  ;;  %1699 = vmatmul.mubr.bf16.vlgmr.msra.gmra.mrb[16].mxu1 %v353_v36  ;;  %v290_v53 = vadd.f32 %v2385_v62, %v289_v45 }
  0xf2   :  { %v1677_v50 = vpop.f32.mrb[10].mxu1  ;;  %v2413_v51 = vpop.eup %1926  ;;  %v229_v52 = vadd.f32 %v2385_v62, %v228_v48  ;;  %v361_v55 = vpack.c.bf16 %v2409_v46, %v2403_v37  ;;  %v1894_v37 = vld [vmem:[%s2779_s5 + $0x30] sm:$0xff]   ;;  %v1895_v46 = vld [vmem:[%s2779_s5 + $0x38] sm:$0xff]  }
  0xf3   :  { %v292_v54 = vpop.f32.mrb[11].mxu1  ;;  %v1929_v56 = vpop.eup %1928  ;;  %1948 = vtanh.f32 %v237_v47  ;;  %v301_v57 = vadd.f32 %v1677_v50, %v2385_v62  ;;  %v360_v58 = vpack.c.bf16 %v2413_v51, %v2406_v42  ;;  %v1892_v50 = vld [vmem:[%s2779_s5 + $0x20] sm:$0xff]   ;;  %v1893_v42 = vld [vmem:[%s2779_s5 + $0x28] sm:$0xff]  }
  0xf4   :  { %v1931_v59 = vpop.eup %1930  ;;  %1950 = vtanh.f32 %v229_v52  ;;  %v293_v60 = vadd.f32 %v2385_v62, %v292_v54  ;;  %1738 = vmatprep.subr.bf16.mxu0 %v1892_v50  ;;  %v1896_v51 = vld [vmem:[%s2781_s7] sm:$0xff]   ;;  %v1897_v52 = vld [vmem:[%s2781_s7 + $0x8] sm:$0xff]   ;;  %v1899_v54 = vld [vmem:[%s2781_s7 + $0x18] sm:$0xff]  }
  0xf5   :  { %v1933_v61 = vpop.eup %1932  ;;  %1952 = vtanh.f32 %v298_v49  ;;  %v1664_v0 = vpop.f32.mrb[12].mxu0  ;;  %1739 = vmatpush3.bf16.msra.mxu0 %v1892_v50  ;;  %1778 = vmatprep.subr.bf16.mxu1 %v1896_v51 }
  0xf6   :  { %v1935_v63 = vpop.eup %1934  ;;  %v355_v1 = vpack.c.bf16 %v1933_v61, %v1929_v56  ;;  %1954 = vtanh.f32 %v290_v53  ;;  %v250_v3 = vadd.f32 %v1664_v0, %v2385_v62  ;;  %v241_v4 = vpop.f32.mrb[13].mxu0  ;;  %1740 = vmatprep.subr.bf16.mxu0 %v1893_v42  ;;  %1779 = vmatpush3.bf16.msra.mxu1 %v1896_v51  ;;  %v1898_v53 = vld [vmem:[%s2781_s7 + $0x10] sm:$0xff]   ;;  %v1901_v56 = vld [vmem:[%s2781_s7 + $0x28] sm:$0xff]  }
  0xf7   :  { %v2423_v2 = vpop.eup %1936  ;;  %v354_v5 = vpack.c.bf16 %v1935_v63, %v1931_v59  ;;  %1956 = vtanh.f32 %v301_v57  ;;  %v1680_v6 = vpop.f32.mrb[12].mxu1  ;;  %v242_v8 = vadd.f32 %v2385_v62, %v241_v4  ;;  %1780 = vmatprep.subr.bf16.mxu1 %v1897_v52  ;;  %v2473_v57 = vld [vmem:[%s2782_s4] ss:$0 sm:$0xff] }
  0xf8   :  { %v1939_v7 = vpop.eup %1938  ;;  %v1665_v9 = vpop.f32.mrb[14].mxu0  ;;  %1958 = vtanh.f32 %v293_v60  ;;  %v314_v14 = vadd.f32 %v1680_v6, %v2385_v62 }
  0xf9   :  { %v305_v10 = vpop.f32.mrb[13].mxu1  ;;  %v1941_v11 = vpop.eup %1940  ;;  %1960 = vtanh.f32 %v250_v3  ;;  %v253_v12 = vadd.f32 %v1665_v9, %v2385_v62  ;;  %1702 = vmatprep.mubr.bf16.mxu1 %v354_v5  ;;  %1741 = vmatpush3.bf16.msra.mxu0 %v1893_v42 }
  0xfa   :  { %v244_v13 = vpop.f32.mrb[15].mxu0  ;;  %v1681_v15 = vpop.f32.mrb[14].mxu1  ;;  %1962 = vtanh.f32 %v242_v8  ;;  %1703 = vmatmul.mubr.bf16.gmra.mrb[20].mxu1 %v355_v1  ;;  %v306_v18 = vadd.f32 %v2385_v62, %v305_v10  ;;  %v363_v20 = vpack.c.bf16 %v1941_v11, %v2423_v2  ;;  %1742 = vmatprep.subr.bf16.mxu0 %v1894_v37 }
  0xfb   :  { %v1943_v16 = vpop.eup %1942  ;;  %v245_v17 = vadd.f32 %v2385_v62, %v244_v13  ;;  %v308_v19 = vpop.f32.mrb[15].mxu1  ;;  %1964 = vtanh.f32 %v253_v12  ;;  %v317_v22 = vadd.f32 %v1681_v15, %v2385_v62  ;;  %1781 = vmatpush3.bf16.msra.mxu1 %v1897_v52 }
  0xfc   :  { %v1945_v21 = vpop.eup %1944  ;;  %v362_v23 = vpack.c.bf16 %v1943_v16, %v1939_v7  ;;  %v309_v25 = vadd.f32 %v2385_v62, %v308_v19  ;;  %1782 = vmatprep.subr.bf16.mxu1 %v1898_v53 }
  0xfd   :  { %v1947_v24 = vpop.eup %1946  ;;  %1966 = vtanh.f32 %v245_v17  ;;  %1743 = vmatpush3.bf16.msra.mxu0 %v1894_v37 }
  0xfe   :  { %v1949_v26 = vpop.eup %1948  ;;  %1968 = vtanh.f32 %v314_v14  ;;  %1744 = vmatprep.subr.bf16.mxu0 %v1895_v46 }
  0xff   :  { %v1951_v27 = vpop.eup %1950  ;;  %v357_v28 = vpack.c.bf16 %v1949_v26, %v1945_v21  ;;  %1970 = vtanh.f32 %v306_v18  ;;  %1783 = vmatpush3.bf16.msra.mxu1 %v1898_v53 }
 0x100   :  { %v1953_v29 = vpop.eup %1952  ;;  %v356_v30 = vpack.c.bf16 %v1951_v27, %v1947_v24  ;;  %1972 = vtanh.f32 %v317_v22  ;;  %1784 = vmatprep.subr.bf16.mxu1 %v1899_v54 }
 0x101   :  { %v1955_v31 = vpop.eup %1954  ;;  %1974 = vtanh.f32 %v309_v25  ;;  %1745 = vmatpush3.bf16.msra.mxu0 %v1895_v46 }
 0x102   :  { %v1957_v32 = vpop.eup %1956  ;;  %1706 = vmatprep.mubr.bf16.mxu1 %v356_v30 }
 0x103   :  { %v1959_v33 = vpop.eup %1958  ;;  %1707 = vmatmul.mubr.bf16.gmra.mrb[24].mxu1 %v357_v28  ;;  %v365_v34 = vpack.c.bf16 %v1957_v32, %v1953_v29 }
 0x104   :  { %v1961_v35 = vpop.eup %1960  ;;  %v364_v36 = vpack.c.bf16 %v1959_v33, %v1955_v31  ;;  %1785 = vmatpush3.bf16.msra.mxu1 %v1899_v54 }
 0x105   :  { %v1963_v38 = vpop.eup %1962 }
 0x106   :  { %v1965_v39 = vpop.eup %1964 }
 0x107   :  { %v1967_v62 = vpop.eup %1966  ;;  %v359_v40 = vpack.c.bf16 %v1965_v39, %v1961_v35 }
 0x108   :  { %v1969_v41 = vpop.eup %1968  ;;  %v358_v43 = vpack.c.bf16 %v1967_v62, %v1963_v38 }
 0x109   :  { %v1971_v44 = vpop.eup %1970 }
 0x10a   :  { %v1973_v45 = vpop.eup %1972  ;;  %1710 = vmatprep.mubr.bf16.mxu1 %v358_v43 }
 0x10b   :  { %v1975_v47 = vpop.eup %1974  ;;  %1711 = vmatmul.mubr.bf16.gmra.mrb[28].mxu1 %v359_v40  ;;  %v367_v48 = vpack.c.bf16 %v1973_v45, %v1969_v41 }
 0x10c   :  { %1714 = vmatprep.mubr.bf16.mxu1 %v360_v58  ;;  %v366_v49 = vpack.c.bf16 %v1975_v47, %v1971_v44 }
 0x113   :  { %1715 = vmatmul.mubr.bf16.gmra.mrb[32].mxu1 %v361_v55  ;;  %v1900_v55 = vld [vmem:[%s2781_s7 + $0x20] sm:$0xff]  }
 0x114   :  { %1718 = vmatprep.mubr.bf16.mxu1 %v362_v23  ;;  %1786 = vmatprep.subr.bf16.mxu1 %v1900_v55 }
 0x115   :  { %1787 = vmatpush3.bf16.msra.mxu1 %v1900_v55 }
 0x116   :  { %1788 = vmatprep.subr.bf16.mxu1 %v1901_v56 }
 0x119   :  { %1789 = vmatpush3.bf16.msra.mxu1 %v1901_v56 }
 0x11b   :  { %1719 = vmatmul.mubr.bf16.gmra.mrb[36].mxu1 %v363_v20 }
 0x11c   :  { %1722 = vmatprep.mubr.bf16.mxu1 %v364_v36 }
 0x123   :  { %1723 = vmatmul.mubr.bf16.gmra.mrb[40].mxu1 %v365_v34 }
 0x124   :  { %1726 = vmatprep.mubr.bf16.mxu1 %v366_v49 }
 0x12b   :  { %1727 = vmatmul.mubr.bf16.gmra.mrb[44].mxu1 %v367_v48 }
 0x1c4   :  { %v1700_v58 = vpop.f32.mrb[16].mxu1 }
 0x1c5   :  { %v482_v59 = vadd.f32 %v1700_v58, %v2473_v57  ;;  %v473_v60 = vpop.f32.mrb[17].mxu1 }
 0x1c6   :  { %v474_v61 = vadd.f32 %v2473_v57, %v473_v60  ;;  %v1701_v63 = vpop.f32.mrb[18].mxu1 }
 0x1c7   :  { %1976 = vtanh.f32 %v482_v59  ;;  %v485_v0 = vadd.f32 %v1701_v63, %v2473_v57  ;;  %v476_v1 = vpop.f32.mrb[19].mxu1 }
 0x1c8   :  { %1978 = vtanh.f32 %v474_v61  ;;  %v477_v2 = vadd.f32 %v2473_v57, %v476_v1 }
 0x1c9   :  { %1980 = vtanh.f32 %v485_v0 }
 0x1ca   :  { %1982 = vtanh.f32 %v477_v2 }
 0x1cd   :  { %v1704_v3 = vpop.f32.mrb[20].mxu1 }
 0x1ce   :  { %v498_v4 = vadd.f32 %v1704_v3, %v2473_v57  ;;  %v489_v5 = vpop.f32.mrb[21].mxu1 }
 0x1cf   :  { %v490_v6 = vadd.f32 %v2473_v57, %v489_v5  ;;  %v1705_v7 = vpop.f32.mrb[22].mxu1 }
 0x1d0   :  { %1984 = vtanh.f32 %v498_v4  ;;  %v501_v8 = vadd.f32 %v1705_v7, %v2473_v57  ;;  %v492_v9 = vpop.f32.mrb[23].mxu1 }
 0x1d1   :  { %1986 = vtanh.f32 %v490_v6  ;;  %v493_v10 = vadd.f32 %v2473_v57, %v492_v9  ;;  %v1977_v11 = vpop.eup %1976 }
 0x1d2   :  { %1988 = vtanh.f32 %v501_v8  ;;  %v1979_v12 = vpop.eup %1978 }
 0x1d3   :  { %1990 = vtanh.f32 %v493_v10  ;;  %v1981_v13 = vpop.eup %1980 }
 0x1d4   :  { %v1983_v14 = vpop.eup %1982  ;;  %v633_v16 = vpack.c.bf16 %v1981_v13, %v1977_v11 }
 0x1d5   :  { %v632_v19 = vpack.c.bf16 %v1983_v14, %v1979_v12 }
 0x1d6   :  { %v1708_v15 = vpop.f32.mrb[24].mxu1 }
 0x1d7   :  { %v514_v17 = vadd.f32 %v1708_v15, %v2473_v57  ;;  %v505_v18 = vpop.f32.mrb[25].mxu1  ;;  %1746 = vmatprep.mubr.bf16.mxu0 %v632_v19 }
 0x1d8   :  { %v506_v20 = vadd.f32 %v2473_v57, %v505_v18  ;;  %v1709_v21 = vpop.f32.mrb[26].mxu1  ;;  %1747 = vmatmul.mubr.bf16.vlgmr.msra.gmra.mrb[16].mxu0 %v633_v16 }
 0x1d9   :  { %1992 = vtanh.f32 %v514_v17  ;;  %v517_v22 = vadd.f32 %v1709_v21, %v2473_v57  ;;  %v508_v23 = vpop.f32.mrb[27].mxu1 }
 0x1da   :  { %1994 = vtanh.f32 %v506_v20  ;;  %v509_v24 = vadd.f32 %v2473_v57, %v508_v23  ;;  %v1985_v25 = vpop.eup %1984 }
 0x1db   :  { %1996 = vtanh.f32 %v517_v22  ;;  %v1987_v26 = vpop.eup %1986 }
 0x1dc   :  { %1998 = vtanh.f32 %v509_v24  ;;  %v1989_v27 = vpop.eup %1988 }
 0x1dd   :  { %v1991_v28 = vpop.eup %1990  ;;  %v635_v30 = vpack.c.bf16 %v1989_v27, %v1985_v25 }
 0x1de   :  { %v1712_v29 = vpop.f32.mrb[28].mxu1  ;;  %v634_v33 = vpack.c.bf16 %v1991_v28, %v1987_v26 }
 0x1df   :  { %v530_v31 = vadd.f32 %v1712_v29, %v2473_v57  ;;  %v521_v32 = vpop.f32.mrb[29].mxu1 }
 0x1e0   :  { %v522_v34 = vadd.f32 %v2473_v57, %v521_v32  ;;  %v1713_v35 = vpop.f32.mrb[30].mxu1  ;;  %1750 = vmatprep.mubr.bf16.mxu0 %v634_v33 }
 0x1e1   :  { %2000 = vtanh.f32 %v530_v31  ;;  %v533_v36 = vadd.f32 %v1713_v35, %v2473_v57  ;;  %v524_v38 = vpop.f32.mrb[31].mxu1  ;;  %1751 = vmatmul.mubr.bf16.gmra.mrb[20].mxu0 %v635_v30 }
 0x1e2   :  { %2002 = vtanh.f32 %v522_v34  ;;  %v525_v39 = vadd.f32 %v2473_v57, %v524_v38 }
 0x1e3   :  { %v1993_v62 = vpop.eup %1992  ;;  %2004 = vtanh.f32 %v533_v36 }
 0x1e4   :  { %v1995_v40 = vpop.eup %1994  ;;  %2006 = vtanh.f32 %v525_v39 }
 0x1e5   :  { %v1997_v41 = vpop.eup %1996 }
 0x1e6   :  { %v1999_v43 = vpop.eup %1998  ;;  %v1716_v44 = vpop.f32.mrb[32].mxu1  ;;  %v637_v45 = vpack.c.bf16 %v1997_v41, %v1993_v62 }
 0x1e7   :  { %v546_v47 = vadd.f32 %v1716_v44, %v2473_v57  ;;  %v537_v48 = vpop.f32.mrb[33].mxu1  ;;  %v636_v49 = vpack.c.bf16 %v1999_v43, %v1995_v40 }
 0x1e8   :  { %v538_v50 = vadd.f32 %v2473_v57, %v537_v48  ;;  %v1717_v42 = vpop.f32.mrb[34].mxu1  ;;  %v1905_v48 = vld [vmem:[%s2783_s9 + $0x8] sm:$0xff]  }
 0x1e9   :  { %2008 = vtanh.f32 %v546_v47  ;;  %v549_v37 = vadd.f32 %v1717_v42, %v2473_v57  ;;  %v540_v46 = vpop.f32.mrb[35].mxu1  ;;  %1754 = vmatprep.mubr.bf16.mxu0 %v636_v49  ;;  %v1904_v47 = vld [vmem:[%s2783_s9] sm:$0xff]   ;;  %v1906_v49 = vld [vmem:[%s2783_s9 + $0x10] sm:$0xff]  }
 0x1ea   :  { %2010 = vtanh.f32 %v538_v50  ;;  %v541_v51 = vadd.f32 %v2473_v57, %v540_v46  ;;  %1755 = vmatmul.mubr.bf16.gmra.mrb[24].mxu0 %v637_v45  ;;  %v1903_v45 = vld [vmem:[%s2781_s7 + $0x38] sm:$0xff]   ;;  %1826 = vmatprep.subr.bf16.mxu0 %v1904_v47  ;;  %v1908_v42 = vld [vmem:[%s2783_s9 + $0x20] sm:$0xff]  }
 0x1eb   :  { %v2001_v52 = vpop.eup %2000  ;;  %2012 = vtanh.f32 %v549_v37  ;;  %1827 = vmatpush3.bf16.msra.mxu0 %v1904_v47  ;;  %v1907_v50 = vld [vmem:[%s2783_s9 + $0x18] sm:$0xff]   ;;  %v1909_v37 = vld [vmem:[%s2783_s9 + $0x28] sm:$0xff]   ;;  %v2534_v46 = vld [vmem:[%s2784_s6] ss:$0 sm:$0xff] }
 0x1ec   :  { %v2003_v53 = vpop.eup %2002  ;;  %2014 = vtanh.f32 %v541_v51  ;;  %1828 = vmatprep.subr.bf16.mxu0 %v1905_v48 }
 0x1ed   :  { %v2005_v54 = vpop.eup %2004 }
 0x1ee   :  { %v2007_v55 = vpop.eup %2006  ;;  %v1720_v56 = vpop.f32.mrb[36].mxu1  ;;  %v639_v58 = vpack.c.bf16 %v2005_v54, %v2001_v52 }
 0x1ef   :  { %v562_v59 = vadd.f32 %v1720_v56, %v2473_v57  ;;  %v553_v60 = vpop.f32.mrb[37].mxu1  ;;  %v638_v61 = vpack.c.bf16 %v2007_v55, %v2003_v53  ;;  %1829 = vmatpush3.bf16.msra.mxu0 %v1905_v48 }
 0x1f0   :  { %v554_v63 = vadd.f32 %v2473_v57, %v553_v60  ;;  %v1721_v0 = vpop.f32.mrb[38].mxu1  ;;  %1830 = vmatprep.subr.bf16.mxu0 %v1906_v49 }
 0x1f1   :  { %2016 = vtanh.f32 %v562_v59  ;;  %v565_v1 = vadd.f32 %v1721_v0, %v2473_v57  ;;  %v556_v2 = vpop.f32.mrb[39].mxu1  ;;  %1758 = vmatprep.mubr.bf16.mxu0 %v638_v61 }
 0x1f2   :  { %2018 = vtanh.f32 %v554_v63  ;;  %v557_v3 = vadd.f32 %v2473_v57, %v556_v2  ;;  %1759 = vmatmul.mubr.bf16.gmra.mrb[28].mxu0 %v639_v58 }
 0x1f3   :  { %v2009_v4 = vpop.eup %2008  ;;  %2020 = vtanh.f32 %v565_v1  ;;  %1831 = vmatpush3.bf16.msra.mxu0 %v1906_v49 }
 0x1f4   :  { %v2011_v5 = vpop.eup %2010  ;;  %2022 = vtanh.f32 %v557_v3  ;;  %1832 = vmatprep.subr.bf16.mxu0 %v1907_v50 }
 0x1f5   :  { %v2013_v6 = vpop.eup %2012 }
 0x1f6   :  { %v2015_v7 = vpop.eup %2014  ;;  %v1724_v8 = vpop.f32.mrb[40].mxu1  ;;  %v641_v9 = vpack.c.bf16 %v2013_v6, %v2009_v4 }
 0x1f7   :  { %v578_v10 = vadd.f32 %v1724_v8, %v2473_v57  ;;  %v569_v11 = vpop.f32.mrb[41].mxu1  ;;  %v640_v12 = vpack.c.bf16 %v2015_v7, %v2011_v5  ;;  %1833 = vmatpush3.bf16.msra.mxu0 %v1907_v50 }
 0x1f8   :  { %v570_v13 = vadd.f32 %v2473_v57, %v569_v11  ;;  %v1725_v14 = vpop.f32.mrb[42].mxu1  ;;  %1834 = vmatprep.subr.bf16.mxu0 %v1908_v42 }
 0x1f9   :  { %2024 = vtanh.f32 %v578_v10  ;;  %v581_v15 = vadd.f32 %v1725_v14, %v2473_v57  ;;  %v572_v16 = vpop.f32.mrb[43].mxu1  ;;  %1762 = vmatprep.mubr.bf16.mxu0 %v640_v12 }
 0x1fa   :  { %2026 = vtanh.f32 %v570_v13  ;;  %v573_v17 = vadd.f32 %v2473_v57, %v572_v16  ;;  %1763 = vmatmul.mubr.bf16.gmra.mrb[32].mxu0 %v641_v9 }
 0x1fb   :  { %v2017_v18 = vpop.eup %2016  ;;  %2028 = vtanh.f32 %v581_v15  ;;  %1835 = vmatpush3.bf16.msra.mxu0 %v1908_v42 }
 0x1fc   :  { %v2019_v19 = vpop.eup %2018  ;;  %2030 = vtanh.f32 %v573_v17  ;;  %1836 = vmatprep.subr.bf16.mxu0 %v1909_v37 }
 0x1fd   :  { %v2021_v20 = vpop.eup %2020 }
 0x1fe   :  { %v2023_v21 = vpop.eup %2022  ;;  %v1728_v22 = vpop.f32.mrb[44].mxu1  ;;  %v643_v23 = vpack.c.bf16 %v2021_v20, %v2017_v18 }
 0x1ff   :  { %v594_v24 = vadd.f32 %v1728_v22, %v2473_v57  ;;  %v585_v25 = vpop.f32.mrb[45].mxu1  ;;  %v642_v26 = vpack.c.bf16 %v2023_v21, %v2019_v19  ;;  %1837 = vmatpush3.bf16.msra.mxu0 %v1909_v37 }
 0x200   :  { %v586_v27 = vadd.f32 %v2473_v57, %v585_v25  ;;  %v1729_v28 = vpop.f32.mrb[46].mxu1 }
 0x201   :  { %2032 = vtanh.f32 %v594_v24  ;;  %v597_v29 = vadd.f32 %v1729_v28, %v2473_v57  ;;  %v588_v30 = vpop.f32.mrb[47].mxu1  ;;  %1766 = vmatprep.mubr.bf16.mxu0 %v642_v26 }
 0x202   :  { %2034 = vtanh.f32 %v586_v27  ;;  %v589_v31 = vadd.f32 %v2473_v57, %v588_v30  ;;  %1767 = vmatmul.mubr.bf16.gmra.mrb[36].mxu0 %v643_v23  ;;  %v1902_v57 = vld [vmem:[%s2781_s7 + $0x30] sm:$0xff]  }
 0x203   :  { %v2025_v32 = vpop.eup %2024  ;;  %2036 = vtanh.f32 %v597_v29  ;;  %1790 = vmatprep.subr.bf16.mxu1 %v1902_v57 }
 0x204   :  { %v2027_v33 = vpop.eup %2026  ;;  %2038 = vtanh.f32 %v589_v31  ;;  %1791 = vmatpush3.bf16.msra.mxu1 %v1902_v57 }
 0x205   :  { %v2029_v34 = vpop.eup %2028  ;;  %1792 = vmatprep.subr.bf16.mxu1 %v1903_v45 }
 0x206   :  { %v2031_v35 = vpop.eup %2030  ;;  %v645_v36 = vpack.c.bf16 %v2029_v34, %v2025_v32 }
 0x207   :  { %v644_v38 = vpack.c.bf16 %v2031_v35, %v2027_v33 }
 0x208   :  { %1793 = vmatpush3.bf16.msra.mxu1 %v1903_v45 }
 0x209   :  { %1770 = vmatprep.mubr.bf16.mxu0 %v644_v38 }
 0x20a   :  { %1771 = vmatmul.mubr.bf16.gmra.mrb[40].mxu0 %v645_v36 }
 0x20b   :  { %v2033_v39 = vpop.eup %2032 }
 0x20c   :  { %v2035_v62 = vpop.eup %2034 }
 0x20d   :  { %v2037_v40 = vpop.eup %2036 }
 0x20e   :  { %v2039_v41 = vpop.eup %2038  ;;  %v647_v43 = vpack.c.bf16 %v2037_v40, %v2033_v39 }
 0x20f   :  { %v646_v44 = vpack.c.bf16 %v2039_v41, %v2035_v62 }
 0x211   :  { %1774 = vmatprep.mubr.bf16.mxu0 %v646_v44 }
 0x212   :  { %1775 = vmatmul.mubr.bf16.gmra.mrb[44].mxu0 %v647_v43 }
 0x2ab   :  { %v1748_v51 = vpop.f32.mrb[16].mxu0 }
 0x2ac   :  { %v762_v52 = vadd.f32 %v1748_v51, %v2534_v46  ;;  %v753_v53 = vpop.f32.mrb[17].mxu0 }
 0x2ad   :  { %v754_v54 = vadd.f32 %v2534_v46, %v753_v53  ;;  %v1749_v55 = vpop.f32.mrb[18].mxu0 }
 0x2ae   :  { %2040 = vtanh.f32 %v762_v52  ;;  %v765_v56 = vadd.f32 %v1749_v55, %v2534_v46  ;;  %v756_v58 = vpop.f32.mrb[19].mxu0 }
 0x2af   :  { %2042 = vtanh.f32 %v754_v54  ;;  %v757_v59 = vadd.f32 %v2534_v46, %v756_v58 }
 0x2b0   :  { %2044 = vtanh.f32 %v765_v56 }
 0x2b1   :  { %2046 = vtanh.f32 %v757_v59 }
 0x2b4   :  { %v1752_v60 = vpop.f32.mrb[20].mxu0 }
 0x2b5   :  { %v778_v61 = vadd.f32 %v1752_v60, %v2534_v46  ;;  %v769_v63 = vpop.f32.mrb[21].mxu0 }
 0x2b6   :  { %v770_v0 = vadd.f32 %v2534_v46, %v769_v63  ;;  %v1753_v1 = vpop.f32.mrb[22].mxu0 }
 0x2b7   :  { %2048 = vtanh.f32 %v778_v61  ;;  %v781_v2 = vadd.f32 %v1753_v1, %v2534_v46  ;;  %v772_v3 = vpop.f32.mrb[23].mxu0 }
 0x2b8   :  { %2050 = vtanh.f32 %v770_v0  ;;  %v773_v4 = vadd.f32 %v2534_v46, %v772_v3  ;;  %v2041_v5 = vpop.eup %2040 }
 0x2b9   :  { %2052 = vtanh.f32 %v781_v2  ;;  %v2043_v6 = vpop.eup %2042 }
 0x2ba   :  { %2054 = vtanh.f32 %v773_v4  ;;  %v2045_v7 = vpop.eup %2044 }
 0x2bb   :  { %v2047_v8 = vpop.eup %2046  ;;  %v913_v10 = vpack.c.bf16 %v2045_v7, %v2041_v5 }
 0x2bc   :  { %v912_v13 = vpack.c.bf16 %v2047_v8, %v2043_v6 }
 0x2bd   :  { %v1756_v9 = vpop.f32.mrb[24].mxu0 }
 0x2be   :  { %v794_v11 = vadd.f32 %v1756_v9, %v2534_v46  ;;  %v785_v12 = vpop.f32.mrb[25].mxu0  ;;  %1794 = vmatprep.mubr.bf16.mxu1 %v912_v13 }
 0x2bf   :  { %v786_v14 = vadd.f32 %v2534_v46, %v785_v12  ;;  %v1757_v15 = vpop.f32.mrb[26].mxu0  ;;  %1795 = vmatmul.mubr.bf16.vlgmr.msra.gmra.mrb[48].mxu1 %v913_v10 }
 0x2c0   :  { %2056 = vtanh.f32 %v794_v11  ;;  %v797_v16 = vadd.f32 %v1757_v15, %v2534_v46  ;;  %v788_v17 = vpop.f32.mrb[27].mxu0 }
 0x2c1   :  { %2058 = vtanh.f32 %v786_v14  ;;  %v789_v18 = vadd.f32 %v2534_v46, %v788_v17  ;;  %v2049_v19 = vpop.eup %2048 }
 0x2c2   :  { %2060 = vtanh.f32 %v797_v16  ;;  %v2051_v20 = vpop.eup %2050 }
 0x2c3   :  { %2062 = vtanh.f32 %v789_v18  ;;  %v2053_v21 = vpop.eup %2052 }
 0x2c4   :  { %v2055_v22 = vpop.eup %2054  ;;  %v915_v24 = vpack.c.bf16 %v2053_v21, %v2049_v19 }
 0x2c5   :  { %v1760_v23 = vpop.f32.mrb[28].mxu0  ;;  %v914_v27 = vpack.c.bf16 %v2055_v22, %v2051_v20 }
 0x2c6   :  { %v810_v25 = vadd.f32 %v1760_v23, %v2534_v46  ;;  %v801_v26 = vpop.f32.mrb[29].mxu0 }
 0x2c7   :  { %v802_v28 = vadd.f32 %v2534_v46, %v801_v26  ;;  %v1761_v29 = vpop.f32.mrb[30].mxu0  ;;  %1798 = vmatprep.mubr.bf16.mxu1 %v914_v27 }
 0x2c8   :  { %2064 = vtanh.f32 %v810_v25  ;;  %v813_v30 = vadd.f32 %v1761_v29, %v2534_v46  ;;  %v804_v31 = vpop.f32.mrb[31].mxu0  ;;  %1799 = vmatmul.mubr.bf16.gmra.mrb[52].mxu1 %v915_v24 }
 0x2c9   :  { %2066 = vtanh.f32 %v802_v28  ;;  %v805_v32 = vadd.f32 %v2534_v46, %v804_v31 }
 0x2ca   :  { %v2057_v33 = vpop.eup %2056  ;;  %2068 = vtanh.f32 %v813_v30 }
 0x2cb   :  { %v2059_v34 = vpop.eup %2058  ;;  %2070 = vtanh.f32 %v805_v32 }
 0x2cc   :  { %v2061_v35 = vpop.eup %2060 }
 0x2cd   :  { %v2063_v36 = vpop.eup %2062  ;;  %v1764_v38 = vpop.f32.mrb[32].mxu0  ;;  %v917_v39 = vpack.c.bf16 %v2061_v35, %v2057_v33 }
 0x2ce   :  { %v826_v62 = vadd.f32 %v1764_v38, %v2534_v46  ;;  %v817_v40 = vpop.f32.mrb[33].mxu0  ;;  %v916_v41 = vpack.c.bf16 %v2063_v36, %v2059_v34 }
 0x2cf   :  { %v818_v43 = vadd.f32 %v2534_v46, %v817_v40  ;;  %v1765_v44 = vpop.f32.mrb[34].mxu0 }
 0x2d0   :  { %2072 = vtanh.f32 %v826_v62  ;;  %v829_v57 = vadd.f32 %v1765_v44, %v2534_v46  ;;  %v820_v45 = vpop.f32.mrb[35].mxu0  ;;  %1802 = vmatprep.mubr.bf16.mxu1 %v916_v41  ;;  %v2577_v62 = vld [vmem:[%s2785_s8] ss:$0 sm:$0xff] }
 0x2d1   :  { %2074 = vtanh.f32 %v818_v43  ;;  %v821_v47 = vadd.f32 %v2534_v46, %v820_v45  ;;  %1803 = vmatmul.mubr.bf16.gmra.mrb[56].mxu1 %v917_v39  ;;  %v1911_v39 = vld [vmem:[%s2783_s9 + $0x38] sm:$0xff]  }
 0x2d2   :  { %v2065_v48 = vpop.eup %2064  ;;  %2076 = vtanh.f32 %v829_v57 }
 0x2d3   :  { %v2067_v49 = vpop.eup %2066  ;;  %2078 = vtanh.f32 %v821_v47 }
 0x2d4   :  { %v2069_v50 = vpop.eup %2068 }
 0x2d5   :  { %v2071_v42 = vpop.eup %2070  ;;  %v1768_v37 = vpop.f32.mrb[36].mxu0  ;;  %v919_v51 = vpack.c.bf16 %v2069_v50, %v2065_v48 }
 0x2d6   :  { %v842_v52 = vadd.f32 %v1768_v37, %v2534_v46  ;;  %v833_v53 = vpop.f32.mrb[37].mxu0  ;;  %v918_v54 = vpack.c.bf16 %v2071_v42, %v2067_v49 }
 0x2d7   :  { %v834_v55 = vadd.f32 %v2534_v46, %v833_v53  ;;  %v1769_v56 = vpop.f32.mrb[38].mxu0 }
 0x2d8   :  { %2080 = vtanh.f32 %v842_v52  ;;  %v845_v58 = vadd.f32 %v1769_v56, %v2534_v46  ;;  %v836_v59 = vpop.f32.mrb[39].mxu0  ;;  %1806 = vmatprep.mubr.bf16.mxu1 %v918_v54 }
 0x2d9   :  { %2082 = vtanh.f32 %v834_v55  ;;  %v837_v60 = vadd.f32 %v2534_v46, %v836_v59  ;;  %1807 = vmatmul.mubr.bf16.gmra.mrb[60].mxu1 %v919_v51 }
 0x2da   :  { %v2073_v61 = vpop.eup %2072  ;;  %2084 = vtanh.f32 %v845_v58 }
 0x2db   :  { %v2075_v63 = vpop.eup %2074  ;;  %2086 = vtanh.f32 %v837_v60 }
 0x2dc   :  { %v2077_v0 = vpop.eup %2076 }
 0x2dd   :  { %v2079_v1 = vpop.eup %2078  ;;  %v1772_v2 = vpop.f32.mrb[40].mxu0  ;;  %v921_v3 = vpack.c.bf16 %v2077_v0, %v2073_v61 }
 0x2de   :  { %v858_v4 = vadd.f32 %v1772_v2, %v2534_v46  ;;  %v849_v5 = vpop.f32.mrb[41].mxu0  ;;  %v920_v6 = vpack.c.bf16 %v2079_v1, %v2075_v63 }
 0x2df   :  { %v850_v7 = vadd.f32 %v2534_v46, %v849_v5  ;;  %v1773_v8 = vpop.f32.mrb[42].mxu0 }
 0x2e0   :  { %2088 = vtanh.f32 %v858_v4  ;;  %v861_v9 = vadd.f32 %v1773_v8, %v2534_v46  ;;  %v852_v10 = vpop.f32.mrb[43].mxu0  ;;  %1810 = vmatprep.mubr.bf16.mxu1 %v920_v6 }
 0x2e1   :  { %2090 = vtanh.f32 %v850_v7  ;;  %v853_v11 = vadd.f32 %v2534_v46, %v852_v10  ;;  %1811 = vmatmul.mubr.bf16.gmra.mrb[64].mxu1 %v921_v3 }
 0x2e2   :  { %v2081_v12 = vpop.eup %2080  ;;  %2092 = vtanh.f32 %v861_v9 }
 0x2e3   :  { %v2083_v13 = vpop.eup %2082  ;;  %2094 = vtanh.f32 %v853_v11 }
 0x2e4   :  { %v2085_v14 = vpop.eup %2084 }
 0x2e5   :  { %v2087_v15 = vpop.eup %2086  ;;  %v1776_v16 = vpop.f32.mrb[44].mxu0  ;;  %v923_v17 = vpack.c.bf16 %v2085_v14, %v2081_v12 }
 0x2e6   :  { %v874_v18 = vadd.f32 %v1776_v16, %v2534_v46  ;;  %v865_v19 = vpop.f32.mrb[45].mxu0  ;;  %v922_v20 = vpack.c.bf16 %v2087_v15, %v2083_v13 }
 0x2e7   :  { %v866_v21 = vadd.f32 %v2534_v46, %v865_v19  ;;  %v1777_v22 = vpop.f32.mrb[46].mxu0 }
 0x2e8   :  { %2096 = vtanh.f32 %v874_v18  ;;  %v877_v23 = vadd.f32 %v1777_v22, %v2534_v46  ;;  %v868_v24 = vpop.f32.mrb[47].mxu0  ;;  %1814 = vmatprep.mubr.bf16.mxu1 %v922_v20 }
 0x2e9   :  { %2098 = vtanh.f32 %v866_v21  ;;  %v869_v25 = vadd.f32 %v2534_v46, %v868_v24  ;;  %1815 = vmatmul.mubr.bf16.gmra.mrb[68].mxu1 %v923_v17  ;;  %v1910_v46 = vld [vmem:[%s2783_s9 + $0x30] sm:$0xff]  }
 0x2ea   :  { %v2089_v26 = vpop.eup %2088  ;;  %2100 = vtanh.f32 %v877_v23  ;;  %1838 = vmatprep.subr.bf16.mxu0 %v1910_v46 }
 0x2eb   :  { %v2091_v27 = vpop.eup %2090  ;;  %2102 = vtanh.f32 %v869_v25  ;;  %1839 = vmatpush3.bf16.msra.mxu0 %v1910_v46 }
 0x2ec   :  { %v2093_v28 = vpop.eup %2092  ;;  %1840 = vmatprep.subr.bf16.mxu0 %v1911_v39 }
 0x2ed   :  { %v2095_v29 = vpop.eup %2094  ;;  %v925_v30 = vpack.c.bf16 %v2093_v28, %v2089_v26 }
 0x2ee   :  { %v924_v31 = vpack.c.bf16 %v2095_v29, %v2091_v27 }
 0x2ef   :  { %1841 = vmatpush3.bf16.msra.mxu0 %v1911_v39 }
 0x2f0   :  { %1818 = vmatprep.mubr.bf16.mxu1 %v924_v31 }
 0x2f1   :  { %1819 = vmatmul.mubr.bf16.gmra.mrb[72].mxu1 %v925_v30 }
 0x2f2   :  { %v2097_v32 = vpop.eup %2096 }
 0x2f3   :  { %v2099_v33 = vpop.eup %2098 }
 0x2f4   :  { %v2101_v34 = vpop.eup %2100 }
 0x2f5   :  { %v2103_v35 = vpop.eup %2102  ;;  %v927_v36 = vpack.c.bf16 %v2101_v34, %v2097_v32 }
 0x2f6   :  { %v926_v38 = vpack.c.bf16 %v2103_v35, %v2099_v33 }
 0x2f8   :  { %1822 = vmatprep.mubr.bf16.mxu1 %v926_v38 }
 0x2f9   :  { %1823 = vmatmul.mubr.bf16.gmra.mrb[76].mxu1 %v927_v36 }
 0x392   :  { %v1796_v40 = vpop.f32.mrb[48].mxu1 }
 0x393   :  { %v1042_v41 = vadd.f32 %v1796_v40, %v2577_v62  ;;  %v1033_v43 = vpop.f32.mrb[49].mxu1 }
 0x394   :  { %v1034_v44 = vadd.f32 %v2577_v62, %v1033_v43  ;;  %v1797_v57 = vpop.f32.mrb[50].mxu1 }
 0x395   :  { %2104 = vtanh.f32 %v1042_v41  ;;  %v1045_v45 = vadd.f32 %v1797_v57, %v2577_v62  ;;  %v1036_v47 = vpop.f32.mrb[51].mxu1 }
 0x396   :  { %2106 = vtanh.f32 %v1034_v44  ;;  %v1037_v48 = vadd.f32 %v2577_v62, %v1036_v47 }
 0x397   :  { %2108 = vtanh.f32 %v1045_v45 }
 0x398   :  { %2110 = vtanh.f32 %v1037_v48 }
 0x39b   :  { %v1800_v49 = vpop.f32.mrb[52].mxu1 }
 0x39c   :  { %v1058_v50 = vadd.f32 %v1800_v49, %v2577_v62  ;;  %v1049_v42 = vpop.f32.mrb[53].mxu1 }
 0x39d   :  { %v1050_v37 = vadd.f32 %v2577_v62, %v1049_v42  ;;  %v1801_v51 = vpop.f32.mrb[54].mxu1 }
 0x39e   :  { %2112 = vtanh.f32 %v1058_v50  ;;  %v1061_v52 = vadd.f32 %v1801_v51, %v2577_v62  ;;  %v1052_v53 = vpop.f32.mrb[55].mxu1 }
 0x39f   :  { %2114 = vtanh.f32 %v1050_v37  ;;  %v1053_v54 = vadd.f32 %v2577_v62, %v1052_v53  ;;  %v2105_v55 = vpop.eup %2104 }
 0x3a0   :  { %2116 = vtanh.f32 %v1061_v52  ;;  %v2107_v56 = vpop.eup %2106 }
 0x3a1   :  { %2118 = vtanh.f32 %v1053_v54  ;;  %v2109_v58 = vpop.eup %2108 }
 0x3a2   :  { %v2111_v59 = vpop.eup %2110  ;;  %v1193_v61 = vpack.c.bf16 %v2109_v58, %v2105_v55 }
 0x3a3   :  { %v1192_v1 = vpack.c.bf16 %v2111_v59, %v2107_v56 }
 0x3a4   :  { %v1804_v60 = vpop.f32.mrb[56].mxu1 }
 0x3a5   :  { %v1074_v63 = vadd.f32 %v1804_v60, %v2577_v62  ;;  %v1065_v0 = vpop.f32.mrb[57].mxu1  ;;  %1842 = vmatprep.mubr.bf16.mxu0 %v1192_v1 }
 0x3a6   :  { %v1066_v2 = vadd.f32 %v2577_v62, %v1065_v0  ;;  %v1805_v3 = vpop.f32.mrb[58].mxu1  ;;  %1843 = vmatmul.mubr.bf16.vlgmr.msra.gmra.mrb[48].mxu0 %v1193_v61 }
 0x3a7   :  { %2120 = vtanh.f32 %v1074_v63  ;;  %v1077_v4 = vadd.f32 %v1805_v3, %v2577_v62  ;;  %v1068_v5 = vpop.f32.mrb[59].mxu1 }
 0x3a8   :  { %2122 = vtanh.f32 %v1066_v2  ;;  %v1069_v6 = vadd.f32 %v2577_v62, %v1068_v5  ;;  %v2113_v7 = vpop.eup %2112 }
 0x3a9   :  { %2124 = vtanh.f32 %v1077_v4  ;;  %v2115_v8 = vpop.eup %2114 }
 0x3aa   :  { %2126 = vtanh.f32 %v1069_v6  ;;  %v2117_v9 = vpop.eup %2116 }
 0x3ab   :  { %v2119_v10 = vpop.eup %2118  ;;  %v1195_v12 = vpack.c.bf16 %v2117_v9, %v2113_v7 }
 0x3ac   :  { %v1808_v11 = vpop.f32.mrb[60].mxu1  ;;  %v1194_v15 = vpack.c.bf16 %v2119_v10, %v2115_v8 }
 0x3ad   :  { %v1090_v13 = vadd.f32 %v1808_v11, %v2577_v62  ;;  %v1081_v14 = vpop.f32.mrb[61].mxu1 }
 0x3ae   :  { %v1082_v16 = vadd.f32 %v2577_v62, %v1081_v14  ;;  %v1809_v17 = vpop.f32.mrb[62].mxu1  ;;  %1846 = vmatprep.mubr.bf16.mxu0 %v1194_v15 }
 0x3af   :  { %2128 = vtanh.f32 %v1090_v13  ;;  %v1093_v18 = vadd.f32 %v1809_v17, %v2577_v62  ;;  %v1084_v19 = vpop.f32.mrb[63].mxu1  ;;  %1847 = vmatmul.mubr.bf16.gmra.mrb[52].mxu0 %v1195_v12 }
 0x3b0   :  { %2130 = vtanh.f32 %v1082_v16  ;;  %v1085_v20 = vadd.f32 %v2577_v62, %v1084_v19 }
 0x3b1   :  { %v2121_v21 = vpop.eup %2120  ;;  %2132 = vtanh.f32 %v1093_v18 }
 0x3b2   :  { %v2123_v22 = vpop.eup %2122  ;;  %2134 = vtanh.f32 %v1085_v20 }
 0x3b3   :  { %v2125_v23 = vpop.eup %2124 }
 0x3b4   :  { %v2127_v24 = vpop.eup %2126  ;;  %v1812_v25 = vpop.f32.mrb[64].mxu1  ;;  %v1197_v26 = vpack.c.bf16 %v2125_v23, %v2121_v21 }
 0x3b5   :  { %v1106_v27 = vadd.f32 %v1812_v25, %v2577_v62  ;;  %v1097_v28 = vpop.f32.mrb[65].mxu1  ;;  %v1196_v29 = vpack.c.bf16 %v2127_v24, %v2123_v22 }
 0x3b6   :  { %v1098_v30 = vadd.f32 %v2577_v62, %v1097_v28  ;;  %v1813_v31 = vpop.f32.mrb[66].mxu1 }
 0x3b7   :  { %2136 = vtanh.f32 %v1106_v27  ;;  %v1109_v32 = vadd.f32 %v1813_v31, %v2577_v62  ;;  %v1100_v33 = vpop.f32.mrb[67].mxu1  ;;  %1850 = vmatprep.mubr.bf16.mxu0 %v1196_v29 }
 0x3b8   :  { %2138 = vtanh.f32 %v1098_v30  ;;  %v1101_v34 = vadd.f32 %v2577_v62, %v1100_v33  ;;  %1851 = vmatmul.mubr.bf16.gmra.mrb[56].mxu0 %v1197_v26 }
 0x3b9   :  { %v2129_v35 = vpop.eup %2128  ;;  %2140 = vtanh.f32 %v1109_v32 }
 0x3ba   :  { %v2131_v36 = vpop.eup %2130  ;;  %2142 = vtanh.f32 %v1101_v34 }
 0x3bb   :  { %v2133_v38 = vpop.eup %2132 }
 0x3bc   :  { %v2135_v46 = vpop.eup %2134  ;;  %v1816_v39 = vpop.f32.mrb[68].mxu1  ;;  %v1199_v40 = vpack.c.bf16 %v2133_v38, %v2129_v35 }
 0x3bd   :  { %v1122_v41 = vadd.f32 %v1816_v39, %v2577_v62  ;;  %v1113_v43 = vpop.f32.mrb[69].mxu1  ;;  %v1198_v44 = vpack.c.bf16 %v2135_v46, %v2131_v36 }
 0x3be   :  { %v1114_v57 = vadd.f32 %v2577_v62, %v1113_v43  ;;  %v1817_v45 = vpop.f32.mrb[70].mxu1 }
 0x3bf   :  { %2144 = vtanh.f32 %v1122_v41  ;;  %v1125_v47 = vadd.f32 %v1817_v45, %v2577_v62  ;;  %v1116_v48 = vpop.f32.mrb[71].mxu1  ;;  %1854 = vmatprep.mubr.bf16.mxu0 %v1198_v44 }
 0x3c0   :  { %2146 = vtanh.f32 %v1114_v57  ;;  %v1117_v49 = vadd.f32 %v2577_v62, %v1116_v48  ;;  %1855 = vmatmul.mubr.bf16.gmra.mrb[60].mxu0 %v1199_v40 }
 0x3c1   :  { %v2137_v50 = vpop.eup %2136  ;;  %2148 = vtanh.f32 %v1125_v47 }
 0x3c2   :  { %v2139_v42 = vpop.eup %2138  ;;  %2150 = vtanh.f32 %v1117_v49 }
 0x3c3   :  { %v2141_v37 = vpop.eup %2140 }
 0x3c4   :  { %v2143_v51 = vpop.eup %2142  ;;  %v1820_v52 = vpop.f32.mrb[72].mxu1  ;;  %v1201_v53 = vpack.c.bf16 %v2141_v37, %v2137_v50 }
 0x3c5   :  { %v1138_v54 = vadd.f32 %v1820_v52, %v2577_v62  ;;  %v1129_v55 = vpop.f32.mrb[73].mxu1  ;;  %v1200_v56 = vpack.c.bf16 %v2143_v51, %v2139_v42 }
 0x3c6   :  { %v1130_v58 = vadd.f32 %v2577_v62, %v1129_v55  ;;  %v1821_v59 = vpop.f32.mrb[74].mxu1 }
 0x3c7   :  { %2152 = vtanh.f32 %v1138_v54  ;;  %v1141_v60 = vadd.f32 %v1821_v59, %v2577_v62  ;;  %v1132_v61 = vpop.f32.mrb[75].mxu1  ;;  %1858 = vmatprep.mubr.bf16.mxu0 %v1200_v56 }
 0x3c8   :  { %2154 = vtanh.f32 %v1130_v58  ;;  %v1133_v63 = vadd.f32 %v2577_v62, %v1132_v61  ;;  %1859 = vmatmul.mubr.bf16.gmra.mrb[64].mxu0 %v1201_v53 }
 0x3c9   :  { %v2145_v0 = vpop.eup %2144  ;;  %2156 = vtanh.f32 %v1141_v60 }
 0x3ca   :  { %v2147_v1 = vpop.eup %2146  ;;  %2158 = vtanh.f32 %v1133_v63 }
 0x3cb   :  { %v2149_v2 = vpop.eup %2148 }
 0x3cc   :  { %v2151_v3 = vpop.eup %2150  ;;  %v1824_v4 = vpop.f32.mrb[76].mxu1  ;;  %v1203_v5 = vpack.c.bf16 %v2149_v2, %v2145_v0 }
 0x3cd   :  { %v1154_v6 = vadd.f32 %v1824_v4, %v2577_v62  ;;  %v1145_v7 = vpop.f32.mrb[77].mxu1  ;;  %v1202_v8 = vpack.c.bf16 %v2151_v3, %v2147_v1 }
 0x3ce   :  { %v1146_v9 = vadd.f32 %v2577_v62, %v1145_v7  ;;  %v1825_v10 = vpop.f32.mrb[78].mxu1 }
 0x3cf   :  { %2160 = vtanh.f32 %v1154_v6  ;;  %v1157_v11 = vadd.f32 %v1825_v10, %v2577_v62  ;;  %v1148_v12 = vpop.f32.mrb[79].mxu1  ;;  %1862 = vmatprep.mubr.bf16.mxu0 %v1202_v8 }
 0x3d0   :  { %2162 = vtanh.f32 %v1146_v9  ;;  %v1149_v13 = vadd.f32 %v2577_v62, %v1148_v12  ;;  %1863 = vmatmul.mubr.bf16.gmra.mrb[68].mxu0 %v1203_v5  ;;  %v2614_v62 = vld [vmem:[%s2786_s10] ss:$0 sm:$0xff] }
 0x3d1   :  { %v2153_v14 = vpop.eup %2152  ;;  %2164 = vtanh.f32 %v1157_v11 }
 0x3d2   :  { %v2155_v15 = vpop.eup %2154  ;;  %2166 = vtanh.f32 %v1149_v13 }
 0x3d3   :  { %v2157_v16 = vpop.eup %2156 }
 0x3d4   :  { %v2159_v17 = vpop.eup %2158  ;;  %v1205_v18 = vpack.c.bf16 %v2157_v16, %v2153_v14 }
 0x3d5   :  { %v1204_v19 = vpack.c.bf16 %v2159_v17, %v2155_v15 }
 0x3d7   :  { %1866 = vmatprep.mubr.bf16.mxu0 %v1204_v19 }
 0x3d8   :  { %1867 = vmatmul.mubr.bf16.gmra.mrb[72].mxu0 %v1205_v18 }
 0x3d9   :  { %v2161_v20 = vpop.eup %2160 }
 0x3da   :  { %v2163_v21 = vpop.eup %2162 }
 0x3db   :  { %v2165_v22 = vpop.eup %2164 }
 0x3dc   :  { %v2167_v23 = vpop.eup %2166  ;;  %v1207_v24 = vpack.c.bf16 %v2165_v22, %v2161_v20 }
 0x3dd   :  { %v1206_v25 = vpack.c.bf16 %v2167_v23, %v2163_v21 }
 0x3df   :  { %1870 = vmatprep.mubr.bf16.mxu0 %v1206_v25 }
 0x3e0   :  { %1871 = vmatmul.mubr.bf16.gmra.mrb[76].mxu0 %v1207_v24 }
 0x479   :  { %v1844_v26 = vpop.f32.mrb[48].mxu0 }
 0x47a   :  { %v1322_v27 = vadd.f32 %v1844_v26, %v2614_v62  ;;  %v1313_v28 = vpop.f32.mrb[49].mxu0 }
 0x47b   :  { %v1314_v29 = vadd.f32 %v2614_v62, %v1313_v28  ;;  %v1845_v30 = vpop.f32.mrb[50].mxu0 }
 0x47c   :  { %1443 = vst.msk [vmem:[%s2787_s11 + $0x10] sm:$0xff] %vm1440_vm1, %v1322_v27  ;;  %v1325_v31 = vadd.f32 %v1845_v30, %v2614_v62  ;;  %v1316_v32 = vpop.f32.mrb[51].mxu0 }
 0x47d   :  { %1441 = vst.msk [vmem:[%s2787_s11] sm:$0xff] %vm1440_vm1, %v1314_v29  ;;  %v1317_v33 = vadd.f32 %v2614_v62, %v1316_v32 }
 0x47e   :  { %1444 = vst.msk [vmem:[%s2787_s11 + $0x18] sm:$0xff] %vm1440_vm1, %v1325_v31 }
 0x47f   :  { %1442 = vst.msk [vmem:[%s2787_s11 + $0x8] sm:$0xff] %vm1440_vm1, %v1317_v33 }
 0x482   :  { %v1848_v34 = vpop.f32.mrb[52].mxu0 }
 0x483   :  { %v1338_v35 = vadd.f32 %v1848_v34, %v2614_v62  ;;  %v1329_v36 = vpop.f32.mrb[53].mxu0 }
 0x484   :  { %v1330_v38 = vadd.f32 %v2614_v62, %v1329_v36  ;;  %v1849_v46 = vpop.f32.mrb[54].mxu0 }
 0x485   :  { %1447 = vst.msk [vmem:[%s2787_s11 + $0x30] sm:$0xff] %vm1440_vm1, %v1338_v35  ;;  %v1341_v39 = vadd.f32 %v1849_v46, %v2614_v62  ;;  %v1332_v40 = vpop.f32.mrb[55].mxu0 }
 0x486   :  { %1445 = vst.msk [vmem:[%s2787_s11 + $0x20] sm:$0xff] %vm1440_vm1, %v1330_v38  ;;  %v1333_v41 = vadd.f32 %v2614_v62, %v1332_v40 }
 0x487   :  { %1448 = vst.msk [vmem:[%s2787_s11 + $0x38] sm:$0xff] %vm1440_vm1, %v1341_v39 }
 0x488   :  { %1446 = vst.msk [vmem:[%s2787_s11 + $0x28] sm:$0xff] %vm1440_vm1, %v1333_v41 }
 0x48b   :  { %v1852_v43 = vpop.f32.mrb[56].mxu0 }
 0x48c   :  { %v1354_v44 = vadd.f32 %v1852_v43, %v2614_v62  ;;  %v1345_v57 = vpop.f32.mrb[57].mxu0 }
 0x48d   :  { %v1346_v45 = vadd.f32 %v2614_v62, %v1345_v57  ;;  %v1853_v47 = vpop.f32.mrb[58].mxu0 }
 0x48e   :  { %1451 = vst.msk [vmem:[%s2787_s11 + $0x50] sm:$0xff] %vm1440_vm1, %v1354_v44  ;;  %v1357_v48 = vadd.f32 %v1853_v47, %v2614_v62  ;;  %v1348_v49 = vpop.f32.mrb[59].mxu0 }
 0x48f   :  { %1449 = vst.msk [vmem:[%s2787_s11 + $0x40] sm:$0xff] %vm1440_vm1, %v1346_v45  ;;  %v1349_v50 = vadd.f32 %v2614_v62, %v1348_v49 }
 0x490   :  { %1452 = vst.msk [vmem:[%s2787_s11 + $0x58] sm:$0xff] %vm1440_vm1, %v1357_v48 }
 0x491   :  { %1450 = vst.msk [vmem:[%s2787_s11 + $0x48] sm:$0xff] %vm1440_vm1, %v1349_v50 }
 0x493   :  { %v1856_v42 = vpop.f32.mrb[60].mxu0 }
 0x494   :  { %v1370_v37 = vadd.f32 %v1856_v42, %v2614_v62  ;;  %v1361_v51 = vpop.f32.mrb[61].mxu0 }
 0x495   :  { %v1362_v52 = vadd.f32 %v2614_v62, %v1361_v51  ;;  %v1857_v53 = vpop.f32.mrb[62].mxu0 }
 0x496   :  { %1455 = vst.msk [vmem:[%s2787_s11 + $0x70] sm:$0xff] %vm1440_vm1, %v1370_v37  ;;  %v1373_v54 = vadd.f32 %v1857_v53, %v2614_v62  ;;  %v1364_v55 = vpop.f32.mrb[63].mxu0 }
 0x497   :  { %1453 = vst.msk [vmem:[%s2787_s11 + $0x60] sm:$0xff] %vm1440_vm1, %v1362_v52  ;;  %v1365_v56 = vadd.f32 %v2614_v62, %v1364_v55 }
 0x498   :  { %1456 = vst.msk [vmem:[%s2787_s11 + $0x78] sm:$0xff] %vm1440_vm1, %v1373_v54 }
 0x499   :  { %1454 = vst.msk [vmem:[%s2787_s11 + $0x68] sm:$0xff] %vm1440_vm1, %v1365_v56 }
 0x49b   :  { %v1860_v58 = vpop.f32.mrb[64].mxu0 }
 0x49c   :  { %v1386_v59 = vadd.f32 %v1860_v58, %v2614_v62  ;;  %v1377_v60 = vpop.f32.mrb[65].mxu0 }
 0x49d   :  { %v1378_v61 = vadd.f32 %v2614_v62, %v1377_v60  ;;  %v1861_v63 = vpop.f32.mrb[66].mxu0 }
 0x49e   :  { %1459 = vst.msk [vmem:[%s2787_s11 + $0x90] sm:$0xff] %vm1440_vm1, %v1386_v59  ;;  %v1389_v0 = vadd.f32 %v1861_v63, %v2614_v62  ;;  %v1380_v1 = vpop.f32.mrb[67].mxu0 }
 0x49f   :  { %1457 = vst.msk [vmem:[%s2787_s11 + $0x80] sm:$0xff] %vm1440_vm1, %v1378_v61  ;;  %v1381_v2 = vadd.f32 %v2614_v62, %v1380_v1 }
 0x4a0   :  { %1460 = vst.msk [vmem:[%s2787_s11 + $0x98] sm:$0xff] %vm1440_vm1, %v1389_v0 }
 0x4a1   :  { %1458 = vst.msk [vmem:[%s2787_s11 + $0x88] sm:$0xff] %vm1440_vm1, %v1381_v2 }
 0x4a3   :  { %v1864_v3 = vpop.f32.mrb[68].mxu0 }
 0x4a4   :  { %v1402_v4 = vadd.f32 %v1864_v3, %v2614_v62  ;;  %v1393_v5 = vpop.f32.mrb[69].mxu0 }
 0x4a5   :  { %v1394_v6 = vadd.f32 %v2614_v62, %v1393_v5  ;;  %v1865_v7 = vpop.f32.mrb[70].mxu0 }
 0x4a6   :  { %1463 = vst.msk [vmem:[%s2787_s11 + $0xb0] sm:$0xff] %vm1440_vm1, %v1402_v4  ;;  %v1405_v8 = vadd.f32 %v1865_v7, %v2614_v62  ;;  %v1396_v9 = vpop.f32.mrb[71].mxu0 }
 0x4a7   :  { %1461 = vst.msk [vmem:[%s2787_s11 + $0xa0] sm:$0xff] %vm1440_vm1, %v1394_v6  ;;  %v1397_v10 = vadd.f32 %v2614_v62, %v1396_v9 }
 0x4a8   :  { %1464 = vst.msk [vmem:[%s2787_s11 + $0xb8] sm:$0xff] %vm1440_vm1, %v1405_v8 }
 0x4a9   :  { %1462 = vst.msk [vmem:[%s2787_s11 + $0xa8] sm:$0xff] %vm1440_vm1, %v1397_v10 }
 0x4ab   :  { %v1868_v11 = vpop.f32.mrb[72].mxu0 }
 0x4ac   :  { %v1418_v12 = vadd.f32 %v1868_v11, %v2614_v62  ;;  %v1409_v13 = vpop.f32.mrb[73].mxu0 }
 0x4ad   :  { %v1410_v14 = vadd.f32 %v2614_v62, %v1409_v13  ;;  %v1869_v15 = vpop.f32.mrb[74].mxu0 }
 0x4ae   :  { %1467 = vst.msk [vmem:[%s2787_s11 + $0xd0] sm:$0xff] %vm1440_vm1, %v1418_v12  ;;  %v1421_v16 = vadd.f32 %v1869_v15, %v2614_v62  ;;  %v1412_v17 = vpop.f32.mrb[75].mxu0 }
 0x4af   :  { %1465 = vst.msk [vmem:[%s2787_s11 + $0xc0] sm:$0xff] %vm1440_vm1, %v1410_v14  ;;  %v1413_v18 = vadd.f32 %v2614_v62, %v1412_v17 }
 0x4b0   :  { %1468 = vst.msk [vmem:[%s2787_s11 + $0xd8] sm:$0xff] %vm1440_vm1, %v1421_v16 }
 0x4b1   :  { %1466 = vst.msk [vmem:[%s2787_s11 + $0xc8] sm:$0xff] %vm1440_vm1, %v1413_v18 }
 0x4b3   :  { %v1872_v19 = vpop.f32.mrb[76].mxu0 }
 0x4b4   :  { %v1434_v20 = vadd.f32 %v1872_v19, %v2614_v62  ;;  %v1425_v21 = vpop.f32.mrb[77].mxu0 }
 0x4b5   :  { %v1426_v22 = vadd.f32 %v2614_v62, %v1425_v21  ;;  %v1873_v23 = vpop.f32.mrb[78].mxu0 }
 0x4b6   :  { %1471 = vst.msk [vmem:[%s2787_s11 + $0xf0] sm:$0xff] %vm1440_vm1, %v1434_v20  ;;  %v1437_v24 = vadd.f32 %v1873_v23, %v2614_v62  ;;  %v1428_v25 = vpop.f32.mrb[79].mxu0 }
 0x4b7   :  { %1469 = vst.msk [vmem:[%s2787_s11 + $0xe0] sm:$0xff] %vm1440_vm1, %v1426_v22  ;;  %v1429_v26 = vadd.f32 %v2614_v62, %v1428_v25 }
 0x4b8   :  { %1472 = vst.msk [vmem:[%s2787_s11 + $0xf8] sm:$0xff] %vm1440_vm1, %v1437_v24 }
 0x4b9   :  { %1470 = vst.msk [vmem:[%s2787_s11 + $0xe8] sm:$0xff] %vm1440_vm1, %v1429_v26 }

</bundles_post_ra>
